<compile_context>
chip_gen: v7x
topology: tpu7x:2x2x1
jax: 0.10.0
libtpu: 0.0.40
codegen_flags: <defaults>
</compile_context>

<pallas_src>
import functools

import jax
import jax.numpy as jnp
from jax import lax
from jax.experimental import pallas as pl
from jax.experimental.pallas import tpu as pltpu

BN_EPS = 1e-5


# ---------------------------------------------------------------------------
# Fused Pallas kernel: one grid step per Depth_Wise block.
# In-kernel layout:
#   activation: (M, W*C), M = N*H, lane = w*C + c   (lane-dense, 128 lanes)
#   hidden:     (M, W*G),            lane = w*G + g (256 lanes)
# ---------------------------------------------------------------------------
def _residual_kernel(x_ref, sud_ref, w1_ref, pdw_ref, w3_ref, p3_ref, o_ref,
                     *, N, H, W, C, G):
    f32 = jnp.float32
    bf16 = jnp.bfloat16
    M = N * H
    WG = W * G
    blk = pl.program_id(0)

    # Block 0: initialize the VMEM-resident activation from the input.
    @pl.when(blk == 0)
    def _():
        o_ref[...] = x_ref[...]

    inv_count = 1.0 / float(N * H * W)

    def bn(t, K, gamma, beta):
        """Training-mode BN over N*H*W per channel (channels tiled along lanes
        with period K).  Stats via XLU sublane reductions (no 1-row MXU
        matmuls), folded across the W lane copies of each channel with a
        log2(W) lane-roll tree; inv*gamma folded into one scale so the
        normalize is a single VPU pass."""
        s1 = jnp.sum(t, axis=0, keepdims=True)              # (1, W*K)
        s2 = jnp.sum(t * t, axis=0, keepdims=True)          # (1, W*K)
        step = W
        while step > 1:
            step //= 2
            s1 = s1 + pltpu.roll(s1, shift=step * K, axis=1)
            s2 = s2 + pltpu.roll(s2, shift=step * K, axis=1)
        mean = s1 * inv_count
        var = s2 * inv_count - mean * mean
        scale = lax.rsqrt(var + BN_EPS) * gamma             # (1, W*K)
        shift = beta - mean * scale
        return t * scale + shift                            # one VPU pass

    pdw = pdw_ref[...]        # (15, W*G): g1,b1,a1 | 9 dw taps (halo-folded) | g2,b2,a2
    p3 = p3_ref[...]          # (2,  W*C): g3, b3

    # ==== Conv_block #1: 1x1 conv (C -> G) + BN + PReLU ======================
    t1 = jnp.dot(o_ref[...].astype(bf16), w1_ref[...],
                 preferred_element_type=f32)                        # (M, W*G)
    t1 = bn(t1, G, pdw[0:1, :], pdw[1:2, :])
    t1 = jnp.where(t1 >= 0.0, t1, pdw[2:3, :] * t1)

    # ==== Conv_block #2: depthwise 3x3 (groups=G) + BN + PReLU ===============
    # H-direction shifts: one stacked boundary-aware shift matmul (s_up ; s_dn)
    # built host-side; halo rows are already zero in the shift matrix.
    t_ud = jnp.dot(sud_ref[...], t1, preferred_element_type=f32)    # (2M, W*G)
    t_up = t_ud[:M, :]        # value from row h-1
    t_dn = t_ud[M:, :]        # value from row h+1

    # W-direction shifts: lane rolls (XLU).  The W-boundary halo zeroing is
    # pre-folded into the left/right tap rows at pack time -> no masks/selects.
    acc = jnp.zeros_like(t1)
    for di, base in enumerate((t_up, t1, t_dn)):
        left = pltpu.roll(base, shift=G, axis=1)                    # from w-1
        right = pltpu.roll(base, shift=WG - G, axis=1)              # from w+1
        r0 = 3 + 3 * di
        acc = acc + left * pdw[r0:r0 + 1, :]
        acc = acc + base * pdw[r0 + 1:r0 + 2, :]
        acc = acc + right * pdw[r0 + 2:r0 + 3, :]

    t2 = bn(acc, G, pdw[12:13, :], pdw[13:14, :])
    t2 = jnp.where(t2 >= 0.0, t2, pdw[14:15, :] * t2)

    # ==== Linear_block: 1x1 conv (G -> C) + BN ===============================
    t3 = jnp.dot(t2.astype(bf16), w3_ref[...],
                 preferred_element_type=f32)                        # (M, W*C)
    t3 = bn(t3, C, p3[0:1, :], p3[1:2, :])

    # ==== residual add; re-read the resident block (keeps `act` out of the
    # live set); result stays resident in VMEM for the next block ============
    o_ref[...] = o_ref[...] + t3


# ---------------------------------------------------------------------------
# Host-side parameter repacking into the lane-dense layout, stacked over blocks.
# ---------------------------------------------------------------------------
def _pack_block_params(params, W):
    eye_w = jnp.eye(W, dtype=jnp.float32)
    G = params[0]["w1"].shape[1]

    # Halo-fold masks for the depthwise taps (lane index = w*G + g).
    w_of_lane = jnp.arange(W * G) // G
    keep_left = (w_of_lane != 0).astype(jnp.float32)          # zero left tap @ w==0
    keep_right = (w_of_lane != W - 1).astype(jnp.float32)     # zero right tap @ w==W-1
    tap_mask = jnp.tile(jnp.stack([keep_left,
                                   jnp.ones((W * G,), jnp.float32),
                                   keep_right], axis=0), (3, 1))      # (9, W*G)

    def tile(v):                      # (K0, K) -> (K0, W*K), lane index w*K + k
        return jnp.tile(v, (1, W))

    w1, pdw, w3, p3 = [], [], [], []
    for p in params:
        # TODO(synk): at real MobileFaceNet sizes (C=64-128, G=128-512, W=14/7)
        # the kron block-diagonal packing explodes W-fold and W is not a power
        # of two; switch to an (N*H*W, C) channels-on-lanes layout there.
        w1.append(jnp.kron(eye_w, p["w1"]).astype(jnp.bfloat16))      # (W*C, W*G)
        w3.append(jnp.kron(eye_w, p["w3"]).astype(jnp.bfloat16))      # (W*G, W*C)
        taps = tile(p["wdw"]) * tap_mask                               # (9, W*G)
        pdw.append(jnp.concatenate(
            [tile(p["g1"]), tile(p["b1"]), tile(p["a1"]), taps,
             tile(p["g2"]), tile(p["b2"]), tile(p["a2"])], axis=0))    # (15, W*G)
        p3.append(jnp.concatenate([tile(p["g3"]), tile(p["b3"])], 0))  # (2, W*C)
    return dict(w1=jnp.stack(w1), pdw=jnp.stack(pdw),
                w3=jnp.stack(w3), p3=jnp.stack(p3))


def _make_shift_matrix(N, H):
    """Stacked boundary-aware row-shift matrices: rows [0:M) pick row h-1
    (zero at h==0), rows [M:2M) pick row h+1 (zero at h==H-1)."""
    M = N * H
    r = jnp.arange(M)
    row, col = r[:, None], r[None, :]
    h = row % H
    s_up = ((col == row - 1) & (h != 0)).astype(jnp.float32)
    s_dn = ((col == row + 1) & (h != H - 1)).astype(jnp.float32)
    return jnp.concatenate([s_up, s_dn], axis=0)                      # (2M, M)


def residual_forward(x_nhwc, params):
    N, H, W, C = x_nhwc.shape
    G = params[0]["w1"].shape[1]
    B = len(params)
    M, WC, WG = N * H, W * C, W * G
    assert W & (W - 1) == 0, "BN lane-fold tree assumes W is a power of two"

    packed = _pack_block_params(params, W)
    s_ud = _make_shift_matrix(N, H)                      # (2M, M), resident
    x2d = x_nhwc.reshape(M, WC)                          # lane-dense (32, 128)

    kernel = functools.partial(_residual_kernel, N=N, H=H, W=W, C=C, G=G)

    out2d = pl.pallas_call(
        kernel,
        out_shape=jax.ShapeDtypeStruct((M, WC), jnp.float32),
        grid_spec=pltpu.PrefetchScalarGridSpec(
            num_scalar_prefetch=0,
            grid=(B,),
            in_specs=[
                pl.BlockSpec((M, WC), lambda b: (0, 0)),            # x (resident)
                pl.BlockSpec((2 * M, M), lambda b: (0, 0)),         # H-shift matrices
                pl.BlockSpec((None, WC, WG), lambda b: (b, 0, 0)),  # 1x1 conv #1 (bf16)
                pl.BlockSpec((None, 15, WG), lambda b: (b, 0, 0)),  # bn1|dw taps|bn2
                pl.BlockSpec((None, WG, WC), lambda b: (b, 0, 0)),  # 1x1 conv #3 (bf16)
                pl.BlockSpec((None, 2, WC), lambda b: (b, 0, 0)),   # bn3
            ],
            out_specs=pl.BlockSpec((M, WC), lambda b: (0, 0)),
        ),
        # Blocks are a sequential dependency (activation carried in the resident
        # output block) -> "arbitrary".
        # TODO(synk): v7x dual-TensorCore split across G (exact for per-channel
        # BN stats / depthwise) is not implemented here.
        compiler_params=pltpu.CompilerParams(
            dimension_semantics=("arbitrary",),
            vmem_limit_bytes=32 * 1024 * 1024),
    )(x2d, s_ud, packed["w1"], packed["pdw"], packed["w3"], packed["p3"])

    return out2d.reshape(N, H, W, C)


# ---------------------------------------------------------------------------
# Pure-JAX f32 reference (module semantics, NHWC) for the correctness check.
# ---------------------------------------------------------------------------
def _bn_train(t, gamma, beta):
    mean = jnp.mean(t, axis=0, keepdims=True)
    var = jnp.mean((t - mean) ** 2, axis=0, keepdims=True)
    inv = jax.lax.rsqrt(var + BN_EPS)
    return (t - mean) * inv * gamma + beta


def ref_depth_wise(x, p):
    N, H, W, C = x.shape
    G = p["w1"].shape[1]
    hi = jax.lax.Precision.HIGHEST
    xf = x.reshape(-1, C)
    t = jnp.dot(xf, p["w1"], precision=hi)
    t = _bn_train(t, p["g1"], p["b1"])
    t = jnp.where(t >= 0.0, t, p["a1"] * t)
    tp = jnp.pad(t.reshape(N, H, W, G), ((0, 0), (1, 1), (1, 1), (0, 0)))
    acc = jnp.zeros((N, H, W, G), jnp.float32)
    for di in range(3):
        for dj in range(3):
            acc = acc + tp[:, di:di + H, dj:dj + W, :] * p["wdw"][3 * di + dj]
    t2 = acc.reshape(-1, G)
    t2 = _bn_train(t2, p["g2"], p["b2"])
    t2 = jnp.where(t2 >= 0.0, t2, p["a2"] * t2)
    t3 = jnp.dot(t2, p["w3"], precision=hi)
    t3 = _bn_train(t3, p["g3"], p["b3"])
    return x + t3.reshape(N, H, W, C)


def ref_forward(x_nhwc, params):
    out = x_nhwc
    for p in params:
        out = ref_depth_wise(out, p)
    return out


# ---------------------------------------------------------------------------
# Deterministic parameter construction (shapes from the module __init__).
# ---------------------------------------------------------------------------
def make_params(key, c, groups, num_block):
    params = []
    for _ in range(num_block):
        ks = jax.random.split(key, 9)
        key = ks[0]
        p = {
            "w1": 0.2 * jax.random.normal(ks[1], (c, groups), jnp.float32),
            "g1": 1.0 + 0.1 * jax.random.normal(ks[2], (1, groups), jnp.float32),
            "b1": 0.1 * jax.random.normal(ks[3], (1, groups), jnp.float32),
            "a1": jnp.full((1, groups), 0.25, jnp.float32),     # PReLU default
            "wdw": 0.2 * jax.random.normal(ks[4], (9, groups), jnp.float32),
            "g2": 1.0 + 0.1 * jax.random.normal(ks[5], (1, groups), jnp.float32),
            "b2": 0.1 * jax.random.normal(ks[6], (1, groups), jnp.float32),
            "a2": jnp.full((1, groups), 0.25, jnp.float32),
            "w3": 0.2 * jax.random.normal(ks[7], (groups, c), jnp.float32),
            "g3": 1.0 + 0.1 * jax.random.normal(ks[8], (1, c), jnp.float32),
            "b3": jnp.zeros((1, c), jnp.float32),
        }
        params.append(p)
    return params


if __name__ == "__main__":
    # Residual(c=8, num_block=2, groups=16, kernel=(3,3), stride=(1,1), padding=(1,1))
    N, C, H, W = 2, 8, 16, 16
    GROUPS, NUM_BLOCK = 16, 2

    key = jax.random.PRNGKey(0)
    kx, kp = jax.random.split(key)

    x_nchw = jax.random.normal(kx, (N, C, H, W), jnp.float32)   # PyTorch layout
    x_nhwc = jnp.transpose(x_nchw, (0, 2, 3, 1))                # kernel layout

    params = make_params(kp, C, GROUPS, NUM_BLOCK)

    out_nhwc = jax.block_until_ready(residual_forward(x_nhwc, params))
    out_nchw = jnp.transpose(out_nhwc, (0, 3, 1, 2))            # back to NCHW

    ref_nhwc = ref_forward(x_nhwc, params)
    assert out_nchw.shape == (N, C, H, W)
    # Tolerance covers the intentional bf16 1x1-conv weight path in the kernel
    # vs. the pure-f32 reference.
    assert jnp.allclose(out_nhwc, ref_nhwc, atol=3e-2, rtol=3e-2), (
        float(jnp.max(jnp.abs(out_nhwc - ref_nhwc))))

    print("KERNEL_OK")
</pallas_src>

<mosaic_0001>
module attributes {stable_mosaic.version = 11 : i64} {
  func.func @_residual_kernel(%arg0: i32, %arg1: memref<32x128xf32, #tpu.memory_space<vmem>>, %arg2: memref<64x32xf32, #tpu.memory_space<vmem>>, %arg3: memref<1x128x256xbf16, #tpu.memory_space<vmem>>, %arg4: memref<1x15x256xf32, #tpu.memory_space<vmem>>, %arg5: memref<1x256x128xbf16, #tpu.memory_space<vmem>>, %arg6: memref<1x2x128xf32, #tpu.memory_space<vmem>>, %arg7: memref<32x128xf32, #tpu.memory_space<vmem>>) attributes {dimension_semantics = [#tpu.dimension_semantics<arbitrary>], iteration_bounds = array<i64: 2>, scalar_prefetch = 0 : i64, scratch_operands = 0 : i64, tpu.core_type = #tpu.core_type<tc>, window_params = [{pipeline_mode = #tpu.pipeline_mode<synchronous>, transform_indices = @transform_0, window_bounds = array<i64: 32, 128>}, {pipeline_mode = #tpu.pipeline_mode<synchronous>, transform_indices = @transform_1, window_bounds = array<i64: 64, 32>}, {transform_indices = @transform_2, window_bounds = array<i64: 1, 128, 256>}, {transform_indices = @transform_3, window_bounds = array<i64: 1, 15, 256>}, {transform_indices = @transform_4, window_bounds = array<i64: 1, 256, 128>}, {transform_indices = @transform_5, window_bounds = array<i64: 1, 2, 128>}, {pipeline_mode = #tpu.pipeline_mode<synchronous>, transform_indices = @transform_6, window_bounds = array<i64: 32, 128>}]} {
    %c0_i32 = arith.constant 0 : i32
    %0 = arith.cmpi eq, %arg0, %c0_i32 : i32
    %1 = arith.extui %0 : i1 to i32
    %c0_i32_0 = arith.constant 0 : i32
    %2 = arith.cmpi ne, %1, %c0_i32_0 : i32
    scf.if %2 {
      %c0_64 = arith.constant 0 : index
      %c0_65 = arith.constant 0 : index
      %195 = vector.load %arg1[%c0_64, %c0_65] : memref<32x128xf32, #tpu.memory_space<vmem>>, vector<32x128xf32>
      %c0_66 = arith.constant 0 : index
      %c0_67 = arith.constant 0 : index
      %196 = vector.load %arg7[%c0_66, %c0_67] : memref<32x128xf32, #tpu.memory_space<vmem>>, vector<32x128xf32>
      tpu.vector_store %arg7[%c0_66, %c0_67], %195 {strides = array<i32>} : memref<32x128xf32, #tpu.memory_space<vmem>>, vector<32x128xf32>,
    } else {
    }
    %c0 = arith.constant 0 : index
    %c0_1 = arith.constant 0 : index
    %c0_2 = arith.constant 0 : index
    %3 = vector.load %arg4[%c0, %c0_1, %c0_2] : memref<1x15x256xf32, #tpu.memory_space<vmem>>, vector<1x15x256xf32>
    %4 = vector.shape_cast %3 : vector<1x15x256xf32> to vector<15x256xf32>
    %c0_3 = arith.constant 0 : index
    %c0_4 = arith.constant 0 : index
    %c0_5 = arith.constant 0 : index
    %5 = vector.load %arg6[%c0_3, %c0_4, %c0_5] : memref<1x2x128xf32, #tpu.memory_space<vmem>>, vector<1x2x128xf32>
    %6 = vector.shape_cast %5 : vector<1x2x128xf32> to vector<2x128xf32>
    %c0_6 = arith.constant 0 : index
    %c0_7 = arith.constant 0 : index
    %7 = vector.load %arg7[%c0_6, %c0_7] : memref<32x128xf32, #tpu.memory_space<vmem>>, vector<32x128xf32>
    %8 = arith.truncf %7 : vector<32x128xf32> to vector<32x128xbf16>
    %c0_8 = arith.constant 0 : index
    %c0_9 = arith.constant 0 : index
    %c0_10 = arith.constant 0 : index
    %9 = vector.load %arg3[%c0_8, %c0_9, %c0_10] : memref<1x128x256xbf16, #tpu.memory_space<vmem>>, vector<1x128x256xbf16>
    %10 = vector.shape_cast %9 : vector<1x128x256xbf16> to vector<128x256xbf16>
    %cst = arith.constant dense<0.000000e+00> : vector<32x256xf32>
    %11 = tpu.matmul %8, %10, %cst {dimension_numbers = #tpu.dot_dimension_numbers<[1], [0], [0], [1], [0, 0, 1, 1], [], []>} : vector<32x128xbf16>, vector<128x256xbf16>, vector<32x256xf32> -> vector<32x256xf32>
    %12 = vector.extract_strided_slice %4 {offsets = [0, 0], sizes = [1, 256], strides = [1, 1]} : vector<15x256xf32> to vector<1x256xf32>
    %13 = vector.extract_strided_slice %4 {offsets = [1, 0], sizes = [1, 256], strides = [1, 1]} : vector<15x256xf32> to vector<1x256xf32>
    %cst_11 = arith.constant dense<0.000000e+00> : vector<256xf32>
    %14 = vector.multi_reduction <add>, %11, %cst_11 [0] : vector<32x256xf32> to vector<256xf32>
    %15 = vector.shape_cast %14 : vector<256xf32> to vector<1x256xf32>
    %16 = arith.mulf %11, %11 : vector<32x256xf32>
    %cst_12 = arith.constant dense<0.000000e+00> : vector<256xf32>
    %17 = vector.multi_reduction <add>, %16, %cst_12 [0] : vector<32x256xf32> to vector<256xf32>
    %18 = vector.shape_cast %17 : vector<256xf32> to vector<1x256xf32>
    %c128_i32 = arith.constant 128 : i32
    %19 = tpu.dynamic_rotate %15 by %c128_i32 dim 1 : vector<1x256xf32>, i32 -> vector<1x256xf32>
    %20 = arith.addf %15, %19 : vector<1x256xf32>
    %c128_i32_13 = arith.constant 128 : i32
    %21 = tpu.dynamic_rotate %18 by %c128_i32_13 dim 1 : vector<1x256xf32>, i32 -> vector<1x256xf32>
    %22 = arith.addf %18, %21 : vector<1x256xf32>
    %c64_i32 = arith.constant 64 : i32
    %23 = tpu.dynamic_rotate %20 by %c64_i32 dim 1 : vector<1x256xf32>, i32 -> vector<1x256xf32>
    %24 = arith.addf %20, %23 : vector<1x256xf32>
    %c64_i32_14 = arith.constant 64 : i32
    %25 = tpu.dynamic_rotate %22 by %c64_i32_14 dim 1 : vector<1x256xf32>, i32 -> vector<1x256xf32>
    %26 = arith.addf %22, %25 : vector<1x256xf32>
    %c32_i32 = arith.constant 32 : i32
    %27 = tpu.dynamic_rotate %24 by %c32_i32 dim 1 : vector<1x256xf32>, i32 -> vector<1x256xf32>
    %28 = arith.addf %24, %27 : vector<1x256xf32>
    %c32_i32_15 = arith.constant 32 : i32
    %29 = tpu.dynamic_rotate %26 by %c32_i32_15 dim 1 : vector<1x256xf32>, i32 -> vector<1x256xf32>
    %30 = arith.addf %26, %29 : vector<1x256xf32>
    %c16_i32 = arith.constant 16 : i32
    %31 = tpu.dynamic_rotate %28 by %c16_i32 dim 1 : vector<1x256xf32>, i32 -> vector<1x256xf32>
    %32 = arith.addf %28, %31 : vector<1x256xf32>
    %c16_i32_16 = arith.constant 16 : i32
    %33 = tpu.dynamic_rotate %30 by %c16_i32_16 dim 1 : vector<1x256xf32>, i32 -> vector<1x256xf32>
    %34 = arith.addf %30, %33 : vector<1x256xf32>
    %cst_17 = arith.constant 0.001953125 : f32
    %35 = vector.broadcast %cst_17 : f32 to vector<1x256xf32>
    %36 = arith.mulf %32, %35 : vector<1x256xf32>
    %cst_18 = arith.constant 0.001953125 : f32
    %37 = vector.broadcast %cst_18 : f32 to vector<1x256xf32>
    %38 = arith.mulf %34, %37 : vector<1x256xf32>
    %39 = arith.mulf %36, %36 : vector<1x256xf32>
    %40 = arith.subf %38, %39 : vector<1x256xf32>
    %cst_19 = arith.constant 9.99999974E-6 : f32
    %41 = vector.broadcast %cst_19 : f32 to vector<1x256xf32>
    %42 = arith.addf %40, %41 : vector<1x256xf32>
    %43 = math.rsqrt %42 : vector<1x256xf32>
    %44 = arith.mulf %43, %12 : vector<1x256xf32>
    %45 = arith.mulf %36, %44 : vector<1x256xf32>
    %46 = arith.subf %13, %45 : vector<1x256xf32>
    %47 = vector.broadcast %44 : vector<1x256xf32> to vector<32x256xf32>
    %48 = arith.mulf %11, %47 : vector<32x256xf32>
    %49 = vector.broadcast %46 : vector<1x256xf32> to vector<32x256xf32>
    %50 = arith.addf %48, %49 : vector<32x256xf32>
    %cst_20 = arith.constant 0.000000e+00 : f32
    %51 = vector.broadcast %cst_20 : f32 to vector<32x256xf32>
    %52 = arith.cmpf oge, %50, %51 : vector<32x256xf32>
    %53 = vector.extract_strided_slice %4 {offsets = [2, 0], sizes = [1, 256], strides = [1, 1]} : vector<15x256xf32> to vector<1x256xf32>
    %54 = vector.broadcast %53 : vector<1x256xf32> to vector<32x256xf32>
    %55 = arith.mulf %54, %50 : vector<32x256xf32>
    %56 = arith.select %52, %50, %55 : vector<32x256xi1>, vector<32x256xf32>
    %c0_21 = arith.constant 0 : index
    %c0_22 = arith.constant 0 : index
    %57 = vector.load %arg2[%c0_21, %c0_22] : memref<64x32xf32, #tpu.memory_space<vmem>>, vector<64x32xf32>
    %cst_23 = arith.constant dense<0.000000e+00> : vector<64x256xf32>
    %58 = tpu.matmul %57, %56, %cst_23 {dimension_numbers = #tpu.dot_dimension_numbers<[1], [0], [0], [1], [0, 0, 1, 1], [], []>} : vector<64x32xf32>, vector<32x256xf32>, vector<64x256xf32> -> vector<64x256xf32>
    %59 = vector.extract_strided_slice %58 {offsets = [0, 0], sizes = [32, 256], strides = [1, 1]} : vector<64x256xf32> to vector<32x256xf32>
    %60 = vector.extract_strided_slice %58 {offsets = [32, 0], sizes = [32, 256], strides = [1, 1]} : vector<64x256xf32> to vector<32x256xf32>
    %cst_24 = arith.constant 0.000000e+00 : f32
    %61 = vector.broadcast %cst_24 : f32 to vector<32x256xf32>
    %c16_i32_25 = arith.constant 16 : i32
    %62 = tpu.dynamic_rotate %59 by %c16_i32_25 dim 1 : vector<32x256xf32>, i32 -> vector<32x256xf32>
    %c240_i32 = arith.constant 240 : i32
    %63 = tpu.dynamic_rotate %59 by %c240_i32 dim 1 : vector<32x256xf32>, i32 -> vector<32x256xf32>
    %64 = vector.extract_strided_slice %4 {offsets = [3, 0], sizes = [1, 256], strides = [1, 1]} : vector<15x256xf32> to vector<1x256xf32>
    %65 = vector.broadcast %64 : vector<1x256xf32> to vector<32x256xf32>
    %66 = arith.mulf %62, %65 : vector<32x256xf32>
    %67 = arith.addf %61, %66 : vector<32x256xf32>
    %68 = vector.extract_strided_slice %4 {offsets = [4, 0], sizes = [1, 256], strides = [1, 1]} : vector<15x256xf32> to vector<1x256xf32>
    %69 = vector.broadcast %68 : vector<1x256xf32> to vector<32x256xf32>
    %70 = arith.mulf %59, %69 : vector<32x256xf32>
    %71 = arith.addf %67, %70 : vector<32x256xf32>
    %72 = vector.extract_strided_slice %4 {offsets = [5, 0], sizes = [1, 256], strides = [1, 1]} : vector<15x256xf32> to vector<1x256xf32>
    %73 = vector.broadcast %72 : vector<1x256xf32> to vector<32x256xf32>
    %74 = arith.mulf %63, %73 : vector<32x256xf32>
    %75 = arith.addf %71, %74 : vector<32x256xf32>
    %c16_i32_26 = arith.constant 16 : i32
    %76 = tpu.dynamic_rotate %56 by %c16_i32_26 dim 1 : vector<32x256xf32>, i32 -> vector<32x256xf32>
    %c240_i32_27 = arith.constant 240 : i32
    %77 = tpu.dynamic_rotate %56 by %c240_i32_27 dim 1 : vector<32x256xf32>, i32 -> vector<32x256xf32>
    %78 = vector.extract_strided_slice %4 {offsets = [6, 0], sizes = [1, 256], strides = [1, 1]} : vector<15x256xf32> to vector<1x256xf32>
    %79 = vector.broadcast %78 : vector<1x256xf32> to vector<32x256xf32>
    %80 = arith.mulf %76, %79 : vector<32x256xf32>
    %81 = arith.addf %75, %80 : vector<32x256xf32>
    %82 = vector.extract_strided_slice %4 {offsets = [7, 0], sizes = [1, 256], strides = [1, 1]} : vector<15x256xf32> to vector<1x256xf32>
    %83 = vector.broadcast %82 : vector<1x256xf32> to vector<32x256xf32>
    %84 = arith.mulf %56, %83 : vector<32x256xf32>
    %85 = arith.addf %81, %84 : vector<32x256xf32>
    %86 = vector.extract_strided_slice %4 {offsets = [8, 0], sizes = [1, 256], strides = [1, 1]} : vector<15x256xf32> to vector<1x256xf32>
    %87 = vector.broadcast %86 : vector<1x256xf32> to vector<32x256xf32>
    %88 = arith.mulf %77, %87 : vector<32x256xf32>
    %89 = arith.addf %85, %88 : vector<32x256xf32>
    %c16_i32_28 = arith.constant 16 : i32
    %90 = tpu.dynamic_rotate %60 by %c16_i32_28 dim 1 : vector<32x256xf32>, i32 -> vector<32x256xf32>
    %c240_i32_29 = arith.constant 240 : i32
    %91 = tpu.dynamic_rotate %60 by %c240_i32_29 dim 1 : vector<32x256xf32>, i32 -> vector<32x256xf32>
    %92 = vector.extract_strided_slice %4 {offsets = [9, 0], sizes = [1, 256], strides = [1, 1]} : vector<15x256xf32> to vector<1x256xf32>
    %93 = vector.broadcast %92 : vector<1x256xf32> to vector<32x256xf32>
    %94 = arith.mulf %90, %93 : vector<32x256xf32>
    %95 = arith.addf %89, %94 : vector<32x256xf32>
    %96 = vector.extract_strided_slice %4 {offsets = [10, 0], sizes = [1, 256], strides = [1, 1]} : vector<15x256xf32> to vector<1x256xf32>
    %97 = vector.broadcast %96 : vector<1x256xf32> to vector<32x256xf32>
    %98 = arith.mulf %60, %97 : vector<32x256xf32>
    %99 = arith.addf %95, %98 : vector<32x256xf32>
    %100 = vector.extract_strided_slice %4 {offsets = [11, 0], sizes = [1, 256], strides = [1, 1]} : vector<15x256xf32> to vector<1x256xf32>
    %101 = vector.broadcast %100 : vector<1x256xf32> to vector<32x256xf32>
    %102 = arith.mulf %91, %101 : vector<32x256xf32>
    %103 = arith.addf %99, %102 : vector<32x256xf32>
    %104 = vector.extract_strided_slice %4 {offsets = [12, 0], sizes = [1, 256], strides = [1, 1]} : vector<15x256xf32> to vector<1x256xf32>
    %105 = vector.extract_strided_slice %4 {offsets = [13, 0], sizes = [1, 256], strides = [1, 1]} : vector<15x256xf32> to vector<1x256xf32>
    %cst_30 = arith.constant dense<0.000000e+00> : vector<256xf32>
    %106 = vector.multi_reduction <add>, %103, %cst_30 [0] : vector<32x256xf32> to vector<256xf32>
    %107 = vector.shape_cast %106 : vector<256xf32> to vector<1x256xf32>
    %108 = arith.mulf %103, %103 : vector<32x256xf32>
    %cst_31 = arith.constant dense<0.000000e+00> : vector<256xf32>
    %109 = vector.multi_reduction <add>, %108, %cst_31 [0] : vector<32x256xf32> to vector<256xf32>
    %110 = vector.shape_cast %109 : vector<256xf32> to vector<1x256xf32>
    %c128_i32_32 = arith.constant 128 : i32
    %111 = tpu.dynamic_rotate %107 by %c128_i32_32 dim 1 : vector<1x256xf32>, i32 -> vector<1x256xf32>
    %112 = arith.addf %107, %111 : vector<1x256xf32>
    %c128_i32_33 = arith.constant 128 : i32
    %113 = tpu.dynamic_rotate %110 by %c128_i32_33 dim 1 : vector<1x256xf32>, i32 -> vector<1x256xf32>
    %114 = arith.addf %110, %113 : vector<1x256xf32>
    %c64_i32_34 = arith.constant 64 : i32
    %115 = tpu.dynamic_rotate %112 by %c64_i32_34 dim 1 : vector<1x256xf32>, i32 -> vector<1x256xf32>
    %116 = arith.addf %112, %115 : vector<1x256xf32>
    %c64_i32_35 = arith.constant 64 : i32
    %117 = tpu.dynamic_rotate %114 by %c64_i32_35 dim 1 : vector<1x256xf32>, i32 -> vector<1x256xf32>
    %118 = arith.addf %114, %117 : vector<1x256xf32>
    %c32_i32_36 = arith.constant 32 : i32
    %119 = tpu.dynamic_rotate %116 by %c32_i32_36 dim 1 : vector<1x256xf32>, i32 -> vector<1x256xf32>
    %120 = arith.addf %116, %119 : vector<1x256xf32>
    %c32_i32_37 = arith.constant 32 : i32
    %121 = tpu.dynamic_rotate %118 by %c32_i32_37 dim 1 : vector<1x256xf32>, i32 -> vector<1x256xf32>
    %122 = arith.addf %118, %121 : vector<1x256xf32>
    %c16_i32_38 = arith.constant 16 : i32
    %123 = tpu.dynamic_rotate %120 by %c16_i32_38 dim 1 : vector<1x256xf32>, i32 -> vector<1x256xf32>
    %124 = arith.addf %120, %123 : vector<1x256xf32>
    %c16_i32_39 = arith.constant 16 : i32
    %125 = tpu.dynamic_rotate %122 by %c16_i32_39 dim 1 : vector<1x256xf32>, i32 -> vector<1x256xf32>
    %126 = arith.addf %122, %125 : vector<1x256xf32>
    %cst_40 = arith.constant 0.001953125 : f32
    %127 = vector.broadcast %cst_40 : f32 to vector<1x256xf32>
    %128 = arith.mulf %124, %127 : vector<1x256xf32>
    %cst_41 = arith.constant 0.001953125 : f32
    %129 = vector.broadcast %cst_41 : f32 to vector<1x256xf32>
    %130 = arith.mulf %126, %129 : vector<1x256xf32>
    %131 = arith.mulf %128, %128 : vector<1x256xf32>
    %132 = arith.subf %130, %131 : vector<1x256xf32>
    %cst_42 = arith.constant 9.99999974E-6 : f32
    %133 = vector.broadcast %cst_42 : f32 to vector<1x256xf32>
    %134 = arith.addf %132, %133 : vector<1x256xf32>
    %135 = math.rsqrt %134 : vector<1x256xf32>
    %136 = arith.mulf %135, %104 : vector<1x256xf32>
    %137 = arith.mulf %128, %136 : vector<1x256xf32>
    %138 = arith.subf %105, %137 : vector<1x256xf32>
    %139 = vector.broadcast %136 : vector<1x256xf32> to vector<32x256xf32>
    %140 = arith.mulf %103, %139 : vector<32x256xf32>
    %141 = vector.broadcast %138 : vector<1x256xf32> to vector<32x256xf32>
    %142 = arith.addf %140, %141 : vector<32x256xf32>
    %cst_43 = arith.constant 0.000000e+00 : f32
    %143 = vector.broadcast %cst_43 : f32 to vector<32x256xf32>
    %144 = arith.cmpf oge, %142, %143 : vector<32x256xf32>
    %145 = vector.extract_strided_slice %4 {offsets = [14, 0], sizes = [1, 256], strides = [1, 1]} : vector<15x256xf32> to vector<1x256xf32>
    %146 = vector.broadcast %145 : vector<1x256xf32> to vector<32x256xf32>
    %147 = arith.mulf %146, %142 : vector<32x256xf32>
    %148 = arith.select %144, %142, %147 : vector<32x256xi1>, vector<32x256xf32>
    %149 = arith.truncf %148 : vector<32x256xf32> to vector<32x256xbf16>
    %c0_44 = arith.constant 0 : index
    %c0_45 = arith.constant 0 : index
    %c0_46 = arith.constant 0 : index
    %150 = vector.load %arg5[%c0_44, %c0_45, %c0_46] : memref<1x256x128xbf16, #tpu.memory_space<vmem>>, vector<1x256x128xbf16>
    %151 = vector.shape_cast %150 : vector<1x256x128xbf16> to vector<256x128xbf16>
    %cst_47 = arith.constant dense<0.000000e+00> : vector<32x128xf32>
    %152 = tpu.matmul %149, %151, %cst_47 {dimension_numbers = #tpu.dot_dimension_numbers<[1], [0], [0], [1], [0, 0, 1, 1], [], []>} : vector<32x256xbf16>, vector<256x128xbf16>, vector<32x128xf32> -> vector<32x128xf32>
    %153 = vector.extract_strided_slice %6 {offsets = [0, 0], sizes = [1, 128], strides = [1, 1]} : vector<2x128xf32> to vector<1x128xf32>
    %154 = vector.extract_strided_slice %6 {offsets = [1, 0], sizes = [1, 128], strides = [1, 1]} : vector<2x128xf32> to vector<1x128xf32>
    %cst_48 = arith.constant dense<0.000000e+00> : vector<128xf32>
    %155 = vector.multi_reduction <add>, %152, %cst_48 [0] : vector<32x128xf32> to vector<128xf32>
    %156 = vector.shape_cast %155 : vector<128xf32> to vector<1x128xf32>
    %157 = arith.mulf %152, %152 : vector<32x128xf32>
    %cst_49 = arith.constant dense<0.000000e+00> : vector<128xf32>
    %158 = vector.multi_reduction <add>, %157, %cst_49 [0] : vector<32x128xf32> to vector<128xf32>
    %159 = vector.shape_cast %158 : vector<128xf32> to vector<1x128xf32>
    %c64_i32_50 = arith.constant 64 : i32
    %160 = tpu.dynamic_rotate %156 by %c64_i32_50 dim 1 : vector<1x128xf32>, i32 -> vector<1x128xf32>
    %161 = arith.addf %156, %160 : vector<1x128xf32>
    %c64_i32_51 = arith.constant 64 : i32
    %162 = tpu.dynamic_rotate %159 by %c64_i32_51 dim 1 : vector<1x128xf32>, i32 -> vector<1x128xf32>
    %163 = arith.addf %159, %162 : vector<1x128xf32>
    %c32_i32_52 = arith.constant 32 : i32
    %164 = tpu.dynamic_rotate %161 by %c32_i32_52 dim 1 : vector<1x128xf32>, i32 -> vector<1x128xf32>
    %165 = arith.addf %161, %164 : vector<1x128xf32>
    %c32_i32_53 = arith.constant 32 : i32
    %166 = tpu.dynamic_rotate %163 by %c32_i32_53 dim 1 : vector<1x128xf32>, i32 -> vector<1x128xf32>
    %167 = arith.addf %163, %166 : vector<1x128xf32>
    %c16_i32_54 = arith.constant 16 : i32
    %168 = tpu.dynamic_rotate %165 by %c16_i32_54 dim 1 : vector<1x128xf32>, i32 -> vector<1x128xf32>
    %169 = arith.addf %165, %168 : vector<1x128xf32>
    %c16_i32_55 = arith.constant 16 : i32
    %170 = tpu.dynamic_rotate %167 by %c16_i32_55 dim 1 : vector<1x128xf32>, i32 -> vector<1x128xf32>
    %171 = arith.addf %167, %170 : vector<1x128xf32>
    %c8_i32 = arith.constant 8 : i32
    %172 = tpu.dynamic_rotate %169 by %c8_i32 dim 1 : vector<1x128xf32>, i32 -> vector<1x128xf32>
    %173 = arith.addf %169, %172 : vector<1x128xf32>
    %c8_i32_56 = arith.constant 8 : i32
    %174 = tpu.dynamic_rotate %171 by %c8_i32_56 dim 1 : vector<1x128xf32>, i32 -> vector<1x128xf32>
    %175 = arith.addf %171, %174 : vector<1x128xf32>
    %cst_57 = arith.constant 0.001953125 : f32
    %176 = vector.broadcast %cst_57 : f32 to vector<1x128xf32>
    %177 = arith.mulf %173, %176 : vector<1x128xf32>
    %cst_58 = arith.constant 0.001953125 : f32
    %178 = vector.broadcast %cst_58 : f32 to vector<1x128xf32>
    %179 = arith.mulf %175, %178 : vector<1x128xf32>
    %180 = arith.mulf %177, %177 : vector<1x128xf32>
    %181 = arith.subf %179, %180 : vector<1x128xf32>
    %cst_59 = arith.constant 9.99999974E-6 : f32
    %182 = vector.broadcast %cst_59 : f32 to vector<1x128xf32>
    %183 = arith.addf %181, %182 : vector<1x128xf32>
    %184 = math.rsqrt %183 : vector<1x128xf32>
    %185 = arith.mulf %184, %153 : vector<1x128xf32>
    %186 = arith.mulf %177, %185 : vector<1x128xf32>
    %187 = arith.subf %154, %186 : vector<1x128xf32>
    %188 = vector.broadcast %185 : vector<1x128xf32> to vector<32x128xf32>
    %189 = arith.mulf %152, %188 : vector<32x128xf32>
    %190 = vector.broadcast %187 : vector<1x128xf32> to vector<32x128xf32>
    %191 = arith.addf %189, %190 : vector<32x128xf32>
    %c0_60 = arith.constant 0 : index
    %c0_61 = arith.constant 0 : index
    %192 = vector.load %arg7[%c0_60, %c0_61] : memref<32x128xf32, #tpu.memory_space<vmem>>, vector<32x128xf32>
    %193 = arith.addf %192, %191 : vector<32x128xf32>
    %c0_62 = arith.constant 0 : index
    %c0_63 = arith.constant 0 : index
    %194 = vector.load %arg7[%c0_62, %c0_63] : memref<32x128xf32, #tpu.memory_space<vmem>>, vector<32x128xf32>
    tpu.vector_store %arg7[%c0_62, %c0_63], %193 {strides = array<i32>} : memref<32x128xf32, #tpu.memory_space<vmem>>, vector<32x128xf32>,
    return
  }
  func.func @transform_0(%arg0: i32) -> (i32, i32) {
    %c0_i32 = arith.constant 0 : i32
    %c0_i32_0 = arith.constant 0 : i32
    %c0_i32_1 = arith.constant 0 : i32
    return %c0_i32, %c0_i32_0 : i32, i32
  }
  func.func @transform_1(%arg0: i32) -> (i32, i32) {
    %c0_i32 = arith.constant 0 : i32
    %c0_i32_0 = arith.constant 0 : i32
    %c0_i32_1 = arith.constant 0 : i32
    return %c0_i32, %c0_i32_0 : i32, i32
  }
  func.func @transform_2(%arg0: i32) -> (i32, i32, i32) {
    %c0_i32 = arith.constant 0 : i32
    %c0_i32_0 = arith.constant 0 : i32
    %c0_i32_1 = arith.constant 0 : i32
    return %arg0, %c0_i32, %c0_i32_0 : i32, i32, i32
  }
  func.func @transform_3(%arg0: i32) -> (i32, i32, i32) {
    %c0_i32 = arith.constant 0 : i32
    %c0_i32_0 = arith.constant 0 : i32
    %c0_i32_1 = arith.constant 0 : i32
    return %arg0, %c0_i32, %c0_i32_0 : i32, i32, i32
  }
  func.func @transform_4(%arg0: i32) -> (i32, i32, i32) {
    %c0_i32 = arith.constant 0 : i32
    %c0_i32_0 = arith.constant 0 : i32
    %c0_i32_1 = arith.constant 0 : i32
    return %arg0, %c0_i32, %c0_i32_0 : i32, i32, i32
  }
  func.func @transform_5(%arg0: i32) -> (i32, i32, i32) {
    %c0_i32 = arith.constant 0 : i32
    %c0_i32_0 = arith.constant 0 : i32
    %c0_i32_1 = arith.constant 0 : i32
    return %arg0, %c0_i32, %c0_i32_0 : i32, i32, i32
  }
  func.func @transform_6(%arg0: i32) -> (i32, i32) {
    %c0_i32 = arith.constant 0 : i32
    %c0_i32_0 = arith.constant 0 : i32
    %c0_i32_1 = arith.constant 0 : i32
    return %c0_i32, %c0_i32_0 : i32, i32
  }
}

</mosaic_0001>

<bundles_post_ra>
// kernel: tpu_custom_call.1
= control target key start
LH: loop header
LB: loop body
LE: loop exit
PB: predicated region body
PF: predicated region fallthrough
CT: control target
= control target key end

     0   :  { %11 = vsyncpa [#allocation3], 0  ;;  %s3051_s0 = inlined_call_operand.vmem [shape: f32[32,128], index: 0, kind: input, shape index: {}]   ;;  %s3052_s1 = inlined_call_operand.vmem [shape: f32[64,32], index: 1, kind: input, shape index: {}]   ;;  %s3053_s2 = inlined_call_operand.hbm [shape: bf16[2,128,256], index: 2, kind: input, shape index: {}]   ;;  %s3054_s3 = inlined_call_operand.vmem [shape: f32[2,15,256], index: 3, kind: input, shape index: {}]   ;;  %s3055_s4 = inlined_call_operand.hbm [shape: bf16[2,256,128], index: 4, kind: input, shape index: {}]   ;;  %s3056_s5 = inlined_call_operand.vmem [shape: f32[2,2,128], index: 5, kind: input, shape index: {}]   ;;  %s3057_s6 = inlined_call_operand.hbm [shape: f32[32,128], index: 6, kind: output, shape index: {}]  }
   0x1   :  { %13 = vsyncpa [#allocation3 + $0x1], 0 }
   0x2   :  { %14 = vsyncpa [#allocation6], 0 }
   0x3   :  { %16 = vsyncpa [#allocation6 + $0x1], 0 }
   0x4   :  { %17 = vsyncpa [#allocation4], 0  ;;  %s2077_s21 = smov 0   ;;  %s2079_s22 = smov 0  }
   0x5   :  { %s2081_s23 = smov 0   ;;  %s2083_s24 = smov 0  }
   0x6 LB: > { %s2096_s25 = sadd.s32 4294967295, %s2025_s24   ;;  %s2099_s26 = sadd.s32 1, %s2025_s24   ;;  %s2025_s24 = sphi %s2083_s24, %s3115_s24   ;;  %s2021_s23 = sphi %s2081_s23, %s3114_s23   ;;  %s2017_s22 = sphi %s2079_s22, %s3113_s22   ;;  %s2013_s21 = sphi %s2077_s21, %s3112_s21  }
   0x7   : > { %s69_s27 = ssub.s32 %s2025_s24, %s2099_s26  ;;  %s72_s28 = sadd.s32 1, %s2021_s23 }
   0x8   : > { %p70_p0 = scmp.eq.s32.totalorder %s69_s27, 0  ;;  %p79_p1 = scmp.ne.s32.totalorder %s2021_s23, %s2017_s22 }
   0x9   : > { %p80_p2 = scmp.eq.s32.totalorder %s2025_s24, 0  ;;  %p85_p3 = scmp.ne.s32.totalorder %s2017_s22, %s2013_s21 }
   0xa   : > { %s2109_s29 = scalar_select %p70_p0, %s2021_s23, %s72_s28  }
   0xb   : > { %p81_p4 = por %p80_p2, %p79_p1  ;;  %p86_p5 = scmp.eq.s32.totalorder %s2096_s25, 0 }
   0xc   : > { %p1799_p6 = scmp.lt.s32.totalorder %s2025_s24, 2  ;;  %s2118_s7 = sand.u32 1, %s2021_s23  }
   0xd   : > { %p2113_p7 = por %p86_p5, %p85_p3  ;;  %s1688_s8 = sshll.u32 %s2118_s7, 7 }
   0xe   : > { %s1745_s9 = sshll.u32 %s2025_s24, 11  ;;  %s218_s13 = scalar_lea.vmem [#allocation2], %s1688_s8 }
   0xf   : > { %s3079_s30 = scalar_select %p2113_p7, 1, 0 }
  0x10   : > { %s2127_s12 = scalar_lea.hbm %s3053_s2, %s1745_s9  ;;  %s225_s14 = sshll.u32 %s218_s13, 4  ;;  %s2131_s14 = int_to_ptr.vmem [resolvable:$true] %s225_s14 }
  0x11   : > { %p2133_p8 = pnand %p1799_p6, %p81_p4  ;;  %s215_s16 = scalar_lea.sflag [#allocation3], %s2118_s7 }
  0x12   : > { %s1897_s17 = scalar_lea.hbm %s2127_s12, 2048  ;;  %s1902_s20 = scalar_lea.hbm %s3053_s2, 4096 }
  0x13   : > { %p1898_p10 = scmp.ne.s32.totalorder %s2127_s12, %s1897_s17  ;;  %p1899_p11 = pneg %p2133_p8 }
  0x14   : > { %p1903_p0 = scmp.lt.u32.totalorder %s2127_s12, %s3053_s2  ;;  %p1904_p1 = scmp.lt.u32.totalorder %s1902_s20, %s1897_s17 }
  0x15   : > { %p1900_p12 = pnand %p1899_p11, %p1898_p10  ;;  %p1906_p3 = scmp.lt.u32.totalorder %s1897_s17, %s2127_s12 }
  0x16   : > { %p1905_p2 = por %p1904_p1, %p1903_p0 }
  0x17   : > { %p1901_p13 = pneg %p1900_p12 }
  0x18   : > { %p1907_p4 = por %p1906_p3, %p1905_p2 }
  0x1a   : > { %p1908_p5 = pnand %p1907_p4, %p1901_p13 }
  0x1c   : > { %1911 = shalt.err (!%p1908_p5)
}
  0x1d   : > { %s1912_s28 = scalar_lea.vmem %s2131_s14, 2048  ;;  %s2027_s10 = smov [#allocation2]  }
  0x1e   : > { %p1913_p6 = scmp.ne.s32.totalorder %s2131_s14, %s1912_s28  ;;  %s1917_s11 = sshll.u32 %s2027_s10, 4  ;;  %s1918_s11 = int_to_ptr.vmem [resolvable:$false] %s1917_s11 }
  0x1f   : > { %s1919_s13 = scalar_lea.vmem %s1918_s11, 4096  ;;  %p1920_p9 = scmp.lt.s32.totalorder %s2131_s14, %s1918_s11 }
  0x20   : > { %p1915_p10 = pnand %p1913_p6, %p1899_p11  ;;  %p1921_p0 = scmp.lt.s32.totalorder %s1919_s13, %s1912_s28 }
  0x22   : > { %p1916_p12 = pneg %p1915_p10  ;;  %p1922_p1 = por %p1921_p0, %p1920_p9 }
  0x24   : > { %p1923_p2 = pnand %p1922_p1, %p1916_p12 }
  0x26   : > { %1926 = shalt.err (!%p1923_p2)
}
  0x27   : > { %s2028_s17 = smov 128   ;;  %s2029_s18 = smov 8  }
  0x28   : > { %1795 = dma.hbm_to_vmem [thread:$0]  (!%p2133_p8), %s2127_s12, 2048, %s2131_s14, %s215_s16, %s2028_s17, %s2028_s17, %s2029_s18  }
  0x29   : > { %p269_p13 = scmp.lt.s32.totalorder %s2025_s24, 3  ;;  %s2172_s21 = scalar_lea.hbm %s3055_s4, %s1745_s9 }
  0x2a   : > { %p3081_p9 = scmp.ge.s32.totalorder %s2025_s24, 1  ;;  %s247_s28 = scalar_lea.vmem [#allocation5], %s1688_s8 }
  0x2b   : > { %s254_s10 = sshll.u32 %s247_s28, 4  ;;  %s244_s12 = scalar_lea.sflag [#allocation6], %s2118_s7  ;;  %s2182_s10 = int_to_ptr.vmem [resolvable:$true] %s254_s10 }
  0x2c   : > { %p2176_p3 = pnand %p3081_p9, %p269_p13  ;;  %s1927_s14 = scalar_lea.hbm %s2172_s21, 2048 }
  0x2d   : > { %p1928_p4 = scmp.ne.s32.totalorder %s2172_s21, %s1927_s14  ;;  %s1932_s16 = scalar_lea.hbm %s3055_s4, 4096 }
  0x2e   : > { %p1933_p10 = scmp.lt.u32.totalorder %s2172_s21, %s3055_s4  ;;  %p1934_p12 = scmp.lt.u32.totalorder %s1932_s16, %s1927_s14 }
  0x2f   : > { %p1930_p5 = pnand %p1928_p4, %p1899_p11  ;;  %p1936_p1 = scmp.lt.u32.totalorder %s1927_s14, %s2172_s21 }
  0x30   : > { %p1935_p0 = por %p1934_p12, %p1933_p10 }
  0x31   : > { %p1931_p6 = pneg %p1930_p5 }
  0x32   : > { %p1937_p2 = por %p1936_p1, %p1935_p0 }
  0x34   : > { %p1938_p13 = pnand %p1937_p2, %p1931_p6 }
  0x36   : > { %1941 = shalt.err (!%p1938_p13)
}
  0x37   : > { %s1942_s8 = scalar_lea.vmem %s2182_s10, 2048  ;;  %s2030_s17 = smov [#allocation5]  }
  0x38   : > { %p1943_p9 = scmp.ne.s32.totalorder %s2182_s10, %s1942_s8  ;;  %s1947_s18 = sshll.u32 %s2030_s17, 4  ;;  %s1948_s18 = int_to_ptr.vmem [resolvable:$false] %s1947_s18 }
  0x39   : > { %s1949_s19 = scalar_lea.vmem %s1948_s18, 4096  ;;  %p1950_p7 = scmp.lt.s32.totalorder %s2182_s10, %s1948_s18 }
  0x3a   : > { %p1945_p4 = pnand %p1943_p9, %p1899_p11  ;;  %p1951_p10 = scmp.lt.s32.totalorder %s1949_s19, %s1942_s8 }
  0x3c   : > { %p1946_p5 = pneg %p1945_p4  ;;  %p1952_p12 = por %p1951_p10, %p1950_p7 }
  0x3e   : > { %p1953_p0 = pnand %p1952_p12, %p1946_p5 }
  0x40   : > { %1956 = shalt.err (!%p1953_p0)
}
  0x41   : > { %s2031_s20 = smov 64   ;;  %s2032_s28 = smov 4  }
  0x42   : > { %1798 = dma.hbm_to_vmem [thread:$0]  (!%p2133_p8), %s2172_s21, 2048, %s2182_s10, %s244_s12, %s2031_s20, %s2031_s20, %s2032_s28  }
  0x43   : > { %273 = sbr.rel (%p2176_p3) target bundleno = 2317 (0x90d), region = 44 }
  0x4a   : > { %s275_s14 = sand.u32 1, %s2017_s22   ;;  %p3083_p7 = scmp.ne.s32.totalorder %s3079_s30, 0 }
  0x4b   : > { %s1695_s24 = sshll.u32 %s275_s14, 7  ;;  %s276_s9 = scalar_lea.sflag [#allocation3], %s275_s14 }
  0x4c   : > { %s2213_s16 = scalar_lea.vmem [#allocation2], %s1695_s24 }
  0x4d   : > { %2000 = dma.done.wait (%p3083_p7), %s276_s9, 2048  }
  0x4e   : > { %2002 = vsyncadd (%p3083_p7), %s276_s9, 4294965248  ;;  %s285_s11 = scalar_lea.sflag [#allocation6], %s275_s14  ;;  %s2219_s15 = scalar_lea.vmem [#allocation5], %s1695_s24 }
  0x4f   : > { %2004 = dma.done.wait (%p3083_p7), %s285_s11, 2048  }
  0x50   : > { %2006 = vsyncadd (%p3083_p7), %s285_s11, 4294965248  ;;  %p326_p8 = scmp.lt.s32.totalorder %s2096_s25, 1  ;;  %p1700_p11 = scmp.ne.s32.totalorder %s2096_s25, 0 }
  0x51   : > { %v340_v0 = vld [vmem:[%s3051_s0] sm:$0xff] (!%p1700_p11)  ;;  %v341_v1 = vld [vmem:[%s3051_s0 + $0x8] sm:$0xff] (!%p1700_p11)  ;;  %v342_v2 = vld [vmem:[%s3051_s0 + $0x10] sm:$0xff] (!%p1700_p11) }
  0x52   : > { %s327_s7 = scalar_select %p326_p8, %s2096_s25, 1 }
  0x53   : > { %339 = sbr.rel (%p1700_p11) target bundleno = 90 (0x5a), region = 56  ;;  %344 = vst [vmem:[#allocation7] sm:$0xff] (!%p1700_p11), %v340_v0  ;;  %345 = vst [vmem:[#allocation7 + $0x8] sm:$0xff] (!%p1700_p11), %v341_v1  ;;  %v343_v3 = vld [vmem:[%s3051_s0 + $0x18] sm:$0xff] (!%p1700_p11) }
  0x54   : > { %s1747_s21 = sshll.u32 %s327_s7, 5  ;;  %s1699_s27 = sshll.u32 %s327_s7, 1  ;;  %346 = vst [vmem:[#allocation7 + $0x10] sm:$0xff] (!%p1700_p11), %v342_v2  ;;  %347 = vst [vmem:[#allocation7 + $0x18] sm:$0xff] (!%p1700_p11), %v343_v3 }
  0x55   : > { %s2230_s13 = scalar_lea.vmem %s3054_s3, %s1747_s21  ;;  %s2235_s18 = scalar_lea.vmem %s3056_s5, %s1699_s27 }
  0x5a PF: > { %v1847_v4 = vld [vmem:[%s2213_s16 + $0x4] ss:$8 sps:$4 sm:$0xff]   ;;  %v1849_v5 = vld [vmem:[%s2213_s16] ss:$8 sps:$4 sm:$0xff]   ;;  %v2033_v6 = vmov 0   ;;  %s2035_s7 = smov 32  }
  0x5b   : > { %487 = vmatprep.mubr.bf16.mxu0 %v2033_v6  ;;  %455 = vmatprep.subr.bf16.mxu0 %v1847_v4  ;;  %v1850_v7 = vld [vmem:[%s2213_s16 + $0x14] ss:$8 sps:$4 sm:$0xff]   ;;  %v1852_v8 = vld [vmem:[%s2213_s16 + $0x10] ss:$8 sps:$4 sm:$0xff]   ;;  %v1853_v9 = vld [vmem:[%s2213_s16 + $0x24] ss:$8 sps:$4 sm:$0xff]  }
  0x5c   : > { %456 = vmatpush1.bf16.msra.mxu0 %v1849_v5  ;;  %v1855_v10 = vld [vmem:[%s2213_s16 + $0x20] ss:$8 sps:$4 sm:$0xff]   ;;  %v1856_v11 = vld [vmem:[%s2213_s16 + $0x34] ss:$8 sps:$4 sm:$0xff]   ;;  %v1858_v12 = vld [vmem:[%s2213_s16 + $0x30] ss:$8 sps:$4 sm:$0xff]  }
  0x5d   : > { %457 = vmatprep.subr.bf16.mxu0 %v1850_v7  ;;  %v1859_v13 = vld [vmem:[%s2213_s16 + $0x44] ss:$8 sps:$4 sm:$0xff]   ;;  %v1861_v14 = vld [vmem:[%s2213_s16 + $0x40] ss:$8 sps:$4 sm:$0xff]   ;;  %v1862_v15 = vld [vmem:[%s2213_s16 + $0x54] ss:$8 sps:$4 sm:$0xff]  }
  0x5e   : > { %v1864_v16 = vld [vmem:[%s2213_s16 + $0x50] ss:$8 sps:$4 sm:$0xff]   ;;  %v1865_v17 = vld [vmem:[%s2213_s16 + $0x64] ss:$8 sps:$4 sm:$0xff]   ;;  %v1867_v18 = vld [vmem:[%s2213_s16 + $0x60] ss:$8 sps:$4 sm:$0xff]  }
  0x5f   : > { %v1868_v19 = vld [vmem:[%s2213_s16 + $0x74] ss:$8 sps:$4 sm:$0xff]   ;;  %v1870_v20 = vld [vmem:[%s2213_s16 + $0x70] ss:$8 sps:$4 sm:$0xff]   ;;  %v353_v21 = vld [vmem:[#allocation7] sm:$0xff]  ;;  %s2034_s16 = smov 64  }
  0x60   : > { %458 = vmatpush1.bf16.msra.mxu0 %v1852_v8  ;;  %v354_v22 = vld [vmem:[#allocation7 + $0x8] sm:$0xff]  ;;  %v355_v24 = vld [vmem:[#allocation7 + $0x10] sm:$0xff]  ;;  %v356_v25 = vld [vmem:[#allocation7 + $0x18] sm:$0xff]  ;;  %s2036_s21 = smov 16   ;;  %vm665_vm8 = vcmask 261120   ;;  %s2038_s17 = smov 112  }
  0x61   : > { %459 = vmatprep.subr.bf16.mxu0 %v1853_v9  ;;  %v357_v23 = vpack.c.bf16 %v354_v22, %v353_v21  ;;  %v358_v26 = vpack.c.bf16 %v356_v25, %v355_v24  ;;  %v2037_v25 = vmov 0.0   ;;  %p1800_p3 = scmp.eq.s32.totalorder %s2096_s25, 1 }
  0x62   : > { %754 = vmatprep.mubr.f32.mxu1 %v2037_v25 }
  0x64   : > { %460 = vmatpush1.bf16.msra.mxu0 %v1855_v10 }
  0x65   : > { %461 = vmatprep.subr.bf16.mxu0 %v1856_v11 }
  0x68   : > { %462 = vmatpush1.bf16.msra.mxu0 %v1858_v12 }
  0x69   : > { %463 = vmatprep.subr.bf16.mxu0 %v1859_v13 }
  0x6c   : > { %464 = vmatpush1.bf16.msra.mxu0 %v1861_v14 }
  0x6d   : > { %465 = vmatprep.subr.bf16.mxu0 %v1862_v15 }
  0x70   : > { %466 = vmatpush1.bf16.msra.mxu0 %v1864_v16 }
  0x71   : > { %467 = vmatprep.subr.bf16.mxu0 %v1865_v17 }
  0x74   : > { %468 = vmatpush1.bf16.msra.mxu0 %v1867_v18 }
  0x75   : > { %469 = vmatprep.subr.bf16.mxu0 %v1868_v19 }
  0x78   : > { %470 = vmatpush1.bf16.msra.mxu0 %v1870_v20 }
  0x7b   : > { %488 = vmatmul.mubr.bf16.vlgmr.msra.gmra.mrb[0].mxu0 %v357_v23 }
  0x7c   : > { %497 = vmatprep.mubr.bf16.mxu0 %v2033_v6 }
  0x83   : > { %498 = vmatmul.mubr.bf16.gmra.mrb[4].mxu0 %v358_v26 }
 0x14e   : > { %v2266_v27 = vpop.f32.mrb[0].mxu0 }
 0x14f   : > { %v2268_v28 = vpop.f32.mrb[1].mxu0  ;;  %v526_v30 = vmul.f32 %v2266_v27, %v2266_v27 }
 0x150   : > { %v2270_v29 = vpop.f32.mrb[2].mxu0  ;;  %v527_v34 = vmul.f32 %v2268_v28, %v2268_v28 }
 0x151   : > { %v508_v31 = vadd.f32 %v2270_v29, %v2266_v27  ;;  %v528_v32 = vmul.f32 %v2270_v29, %v2270_v29  ;;  %v2278_v33 = vpop.f32.mrb[3].mxu0 }
 0x152   : > { %v517_v35 = vadd.f32 %v2278_v33, %v2268_v28  ;;  %v529_v36 = vmul.f32 %v2278_v33, %v2278_v33 }
 0x153   : > { %v534_v37 = vadd.f32 %v528_v32, %v526_v30 }
 0x154   : > { %v543_v38 = vadd.f32 %v529_v36, %v527_v34 }
 0x156   : > { %v2286_v39 = vpop.f32.mrb[4].mxu0 }
 0x157   : > { %v509_v40 = vadd.f32 %v508_v31, %v2286_v39  ;;  %v530_v41 = vmul.f32 %v2286_v39, %v2286_v39  ;;  %v2291_v42 = vpop.f32.mrb[5].mxu0 }
 0x158   : > { %v518_v43 = vadd.f32 %v517_v35, %v2291_v42  ;;  %v531_v44 = vmul.f32 %v2291_v42, %v2291_v42  ;;  %v2296_v45 = vpop.f32.mrb[6].mxu0 }
 0x159   : > { %v535_v46 = vadd.f32 %v534_v37, %v530_v41  ;;  %v510_v47 = vadd.f32 %v509_v40, %v2296_v45  ;;  %v532_v48 = vmul.f32 %v2296_v45, %v2296_v45  ;;  %v2301_v49 = vpop.f32.mrb[7].mxu0  ;;  %v556_v40 = vlaneseq }
 0x15a   : > { %v544_v50 = vadd.f32 %v543_v38, %v531_v44  ;;  %v519_v51 = vadd.f32 %v518_v43, %v2301_v49  ;;  %v533_v52 = vmul.f32 %v2301_v49, %v2301_v49  ;;  %v2317_v43 = vld [vmem:[%s2230_s13] sm:$0xff]  ;;  %v2320_v44 = vld [vmem:[%s2230_s13 + $0x8] sm:$0xff] }
 0x15b   : > { %v511_v53 = vrot.slane %v510_v47, 4  ;;  %v536_v54 = vadd.f32 %v535_v46, %v532_v48  ;;  %v2314_v41 = vshrl.u32 %v556_v40, 7 }
 0x15c   : > { %v520_v55 = vrot.slane %v519_v51, 4  ;;  %v545_v56 = vadd.f32 %v544_v50, %v533_v52 }
 0x15d   : > { %v512_v57 = vadd.f32 %v511_v53, %v510_v47  ;;  %v537_v58 = vrot.slane %v536_v54, 4  ;;  %v2323_v47 = vsub.s32 0, %v2314_v41 }
 0x15e   : > { %v521_v59 = vadd.f32 %v520_v55, %v519_v51  ;;  %v546_v60 = vrot.slane %v545_v56, 4 }
 0x15f   : > { %v538_v61 = vadd.f32 %v537_v58, %v536_v54  ;;  %v513_v62 = vrot.slane %v512_v57, 2  ;;  %3084 = vst [vmem:[#allocation11_spill] sm:$0xff] %v2323_v47  ;;  %v2329_v54 = vsub.s32 2, %v2314_v41  ;;  %v2333_v58 = vsub.s32 1, %v2314_v41 }
 0x160   : > { %v522_v63 = vrot.slane %v521_v59, 2  ;;  %v547_v0 = vadd.f32 %v546_v60, %v545_v56 }
 0x161   : > { %v539_v1 = vrot.slane %v538_v61, 2  ;;  %v514_v2 = vadd.f32 %v513_v62, %v512_v57  ;;  %3085 = vst [vmem:[#allocation12_spill] sm:$0xff] %v2329_v54  ;;  %v636_v62 = vrot.slane %v2317_v43, %v2329_v54 }
 0x162   : > { %v548_v3 = vrot.slane %v547_v0, 2  ;;  %v523_v4 = vadd.f32 %v522_v63, %v521_v59 }
 0x163   : > { %v515_v5 = vrot.slane %v514_v2, 1  ;;  %v540_v6 = vadd.f32 %v539_v1, %v538_v61 }
 0x164   : > { %v549_v7 = vadd.f32 %v548_v3, %v547_v0  ;;  %v524_v8 = vrot.slane %v523_v4, 1  ;;  %v640_v0 = vrot.slane %v2320_v44, %v2329_v54 }
 0x165   : > { %v516_v9 = vadd.f32 %v515_v5, %v514_v2  ;;  %v541_v10 = vrot.slane %v540_v6, 1 }
 0x166   : > { %v525_v11 = vadd.f32 %v524_v8, %v523_v4  ;;  %v550_v12 = vrot.slane %v549_v7, 1 }
 0x167   : > { %v542_v13 = vadd.f32 %v541_v10, %v540_v6 }
 0x168   : > { %v552_v14 = vadd.f32 %v525_v11, %v516_v9  ;;  %v551_v15 = vadd.f32 %v550_v12, %v549_v7 }
 0x16a   : > { %554 = vrot.lane.b32.xlu0 %v552_v14, %s2034_s16  ;;  %v553_v16 = vadd.f32 %v551_v15, %v542_v13 }
 0x16e   : > { %559 = vrot.lane.b32.xlu0 %v553_v16, %s2034_s16 }
 0x1dc   : > { %v555_v17 = vpop.permute.xlu0 %554 }
 0x1dd   : > { %v558_v18 = vadd.f32 %v555_v17, %v552_v14 }
 0x1df   : > { %562 = vrot.lane.b32.xlu1 %v558_v18, %s2035_s7 }
 0x1e0   : > { %v560_v19 = vpop.permute.xlu0 %559 }
 0x1e1   : > { %v561_v20 = vadd.f32 %v560_v19, %v553_v16 }
 0x1e3   : > { %565 = vrot.lane.b32.xlu1 %v561_v20, %s2035_s7 }
 0x251   : > { %v563_v21 = vpop.permute.xlu1 %562 }
 0x252   : > { %v564_v22 = vadd.f32 %v563_v21, %v558_v18 }
 0x254   : > { %568 = vrot.lane.b32.xlu0 %v564_v22, %s2036_s21 }
 0x255   : > { %v566_v23 = vpop.permute.xlu1 %565 }
 0x256   : > { %v567_v24 = vadd.f32 %v566_v23, %v561_v20 }
 0x258   : > { %572 = vrot.lane.b32.xlu1 %v567_v24, %s2036_s21 }
 0x2c6   : > { %v569_v26 = vpop.permute.xlu0 %568 }
 0x2c7   : > { %v571_v30 = vadd.f32 %v569_v26, %v564_v22 }
 0x2c9   : > { %v575_v31 = vmul.f32 0.001953125, %v571_v30 }
 0x2ca   : > { %v573_v32 = vpop.permute.xlu1 %572 }
 0x2cb   : > { %v574_v34 = vadd.f32 %v573_v32, %v567_v24  ;;  %v577_v36 = vmul.f32 %v575_v31, %v575_v31 }
 0x2cd   : > { %v576_v35 = vmul.f32 0.001953125, %v574_v34  ;;  %v657_v34 = vld [vmem:[%s3052_s1] sm:$0xff] }
 0x2cf   : > { %v578_v37 = vsub.f32 %v576_v35, %v577_v36  ;;  %v658_v35 = vld [vmem:[%s3052_s1 + $0x8] sm:$0xff]  ;;  %v659_v36 = vld [vmem:[%s3052_s1 + $0x10] sm:$0xff] }
 0x2d1   : > { %v579_v38 = vadd.f32 1e-05, %v578_v37  ;;  %v660_v37 = vld [vmem:[%s3052_s1 + $0x18] sm:$0xff] }
 0x2d3   : > { %1887 = vrsqrt.f32 %v579_v38  ;;  %v661_v38 = vld [vmem:[%s3052_s1 + $0x20] sm:$0xff] }
 0x2dd   : > { %v1888_v46 = vpop.eup %1887 }
 0x2de   : > { %v581_v48 = vmul.f32 %v1888_v46, %v2317_v43  ;;  %v582_v50 = vmul.f32 %v1888_v46, %v2320_v44  ;;  %v662_v46 = vld [vmem:[%s3052_s1 + $0x28] sm:$0xff] }
 0x2e0   : > { %v583_v51 = vmul.f32 %v581_v48, %v575_v31  ;;  %v584_v52 = vmul.f32 %v582_v50, %v575_v31  ;;  %v596_v53 = vrot.slane %v581_v48, %v2323_v47  ;;  %v600_v57 = vrot.slane %v582_v50, %v2323_v47  ;;  %v663_v48 = vld [vmem:[%s3052_s1 + $0x30] sm:$0xff]  ;;  %v664_v50 = vld [vmem:[%s3052_s1 + $0x38] sm:$0xff] }
 0x2e2   : > { %v587_v55 = vrot.slane %v583_v51, 7  ;;  %v588_v56 = vrot.slane %v584_v52, 7  ;;  %v603_v61 = vmul.f32 %v596_v53, %v2270_v29  ;;  %v601_v63 = vmul.f32 %v596_v53, %v2266_v27 }
 0x2e3   : > { %v602_v2 = vmul.f32 %v600_v57, %v2268_v28  ;;  %v604_v3 = vmul.f32 %v600_v57, %v2278_v33  ;;  %v606_v5 = vmul.f32 %v600_v57, %v2291_v42  ;;  %v608_v29 = vmul.f32 %v600_v57, %v2301_v49 }
 0x2e4   : > { %v591_v59 = vsub.f32 %v2317_v43, %v587_v55  ;;  %v592_v60 = vsub.f32 %v2320_v44, %v588_v56  ;;  %v605_v6 = vmul.f32 %v596_v53, %v2286_v39  ;;  %v607_v7 = vmul.f32 %v596_v53, %v2296_v45 }
 0x2e5   : > { %v2447_v51 = vand.u32 127, %v556_v40 }
 0x2e6   : > { %v612_v1 = vrot.slane %v591_v59, %v2333_v58  ;;  %v616_v4 = vrot.slane %v592_v60, %v2333_v58 }
 0x2e7   : > { %vm570_vm9 = vcmp.lt.s32.totalorder %v2447_v51, 16  ;;  %vm843_vm10 = vcmp.lt.s32.totalorder %v2447_v51, 112 }
 0x2e8   : > { %v619_v27 = vadd.f32 %v612_v1, %v603_v61  ;;  %v617_v8 = vadd.f32 %v612_v1, %v601_v63  ;;  %v618_v9 = vadd.f32 %v616_v4, %v602_v2  ;;  %v620_v10 = vadd.f32 %v616_v4, %v604_v3 }
 0x2e9   : > { %v622_v11 = vadd.f32 %v616_v4, %v606_v5  ;;  %v624_v12 = vadd.f32 %v616_v4, %v608_v29  ;;  %v621_v13 = vadd.f32 %v612_v1, %v605_v6  ;;  %v623_v28 = vadd.f32 %v612_v1, %v607_v7 }
 0x2ea   : > { %vm627_vm0 = vcmp.ge.f32.partialorder %v619_v27, 0.0  ;;  %v643_v33 = vmul.f32 %v636_v62, %v619_v27  ;;  %vm625_vm1 = vcmp.ge.f32.partialorder %v617_v8, 0.0  ;;  %v641_v14 = vmul.f32 %v636_v62, %v617_v8 }
 0x2eb   : > { %vm626_vm2 = vcmp.ge.f32.partialorder %v618_v9, 0.0  ;;  %vm628_vm3 = vcmp.ge.f32.partialorder %v620_v10, 0.0  ;;  %v642_v42 = vmul.f32 %v640_v0, %v618_v9  ;;  %v644_v49 = vmul.f32 %v640_v0, %v620_v10 }
 0x2ec   : > { %v2351_v15 = vsel %vm627_vm0, %v619_v27, %v643_v33  ;;  %v2353_v39 = vsel %vm625_vm1, %v617_v8, %v641_v14  ;;  %vm630_vm4 = vcmp.ge.f32.partialorder %v622_v11, 0.0  ;;  %vm632_vm5 = vcmp.ge.f32.partialorder %v624_v12, 0.0 }
 0x2ed   : > { %926 = vrot.lane.b32.xlu1 %v2351_v15, %s2036_s21  ;;  %924 = vrot.lane.b32.xlu0 %v2353_v39, %s2036_s21  ;;  %v2359_v45 = vsel %vm626_vm2, %v618_v9, %v642_v42  ;;  %v2361_v16 = vsel %vm628_vm3, %v620_v10, %v644_v49  ;;  %v1778_v17 = vpack.c.bf16 %v2351_v15, %v2353_v39  ;;  %vm629_vm6 = vcmp.ge.f32.partialorder %v621_v13, 0.0 }
 0x2ee   : > { %v646_v18 = vmul.f32 %v640_v0, %v622_v11  ;;  %v1776_v19 = vpack.c.bf16 %v2361_v16, %v2359_v45  ;;  %v648_v20 = vmul.f32 %v640_v0, %v624_v12  ;;  %vm631_vm7 = vcmp.ge.f32.partialorder %v623_v28, 0.0 }
 0x2ef   : > { %v645_v22 = vmul.f32 %v636_v62, %v621_v13  ;;  %v647_v23 = vmul.f32 %v636_v62, %v623_v28 }
 0x2f0   : > { %v2367_v21 = vsel %vm630_vm4, %v622_v11, %v646_v18  ;;  %1777 = vmatprep.subr.bf16.mxu1 %v1776_v19  ;;  %v2371_v24 = vsel %vm632_vm5, %v624_v12, %v648_v20 }
 0x2f1   : > { %934 = vrot.lane.b32.xlu1 %v2361_v16, %s2036_s21  ;;  %1779 = vmatpush1.bf16.msra.mxu1 %v1778_v17  ;;  %v1780_v26 = vpack.c.bf16 %v2371_v24, %v2367_v21  ;;  %v2377_v30 = vsel %vm629_vm6, %v621_v13, %v645_v22  ;;  %v2379_v31 = vsel %vm631_vm7, %v623_v28, %v647_v23 }
 0x2f2   : > { %932 = vrot.lane.b32.xlu0 %v2359_v45, %s2036_s21  ;;  %v1782_v32 = vpack.c.bf16 %v2379_v31, %v2377_v30 }
 0x2f3   : > { %1781 = vmatprep.subr.bf16.mxu1 %v1780_v26 }
 0x2f5   : > { %936 = vrot.lane.b32.xlu1 %v2367_v21, %s2036_s21  ;;  %1783 = vmatpush1.bf16.msra.mxu1 %v1782_v32 }
 0x2f6   : > { %928 = vrot.lane.b32.xlu0 %v2377_v30, %s2036_s21 }
 0x2f8   : > { %1717 = vmatmul.mubr.msk.f32.vlgmr.msra.gmra.mrb[0].mxu1 %vm665_vm8, %v657_v34 }
 0x2f9   : > { %938 = vrot.lane.b32.xlu1 %v2371_v24, %s2036_s21  ;;  %760 = vmatprep.mubr.f32.mxu1 %v2037_v25 }
 0x2fa   : > { %930 = vrot.lane.b32.xlu0 %v2379_v31, %s2036_s21 }
 0x2fc   : > { %1718 = vmatmul.mubr.msk.f32.gmra.mrb[2].mxu1 %vm665_vm8, %v658_v35 }
 0x2fd   : > { %950 = vrot.lane.b32.xlu1 %v2351_v15, %s2038_s17  ;;  %766 = vmatprep.mubr.f32.mxu1 %v2037_v25 }
 0x2fe   : > { %948 = vrot.lane.b32.xlu0 %v2353_v39, %s2038_s17 }
 0x300   : > { %1719 = vmatmul.mubr.msk.f32.gmra.mrb[4].mxu1 %vm665_vm8, %v659_v36 }
 0x301   : > { %958 = vrot.lane.b32.xlu1 %v2361_v16, %s2038_s17  ;;  %772 = vmatprep.mubr.f32.mxu1 %v2037_v25 }
 0x302   : > { %956 = vrot.lane.b32.xlu0 %v2359_v45, %s2038_s17 }
 0x304   : > { %1720 = vmatmul.mubr.msk.f32.gmra.mrb[6].mxu1 %vm665_vm8, %v660_v37 }
 0x305   : > { %960 = vrot.lane.b32.xlu1 %v2367_v21, %s2038_s17  ;;  %778 = vmatprep.mubr.f32.mxu1 %v2037_v25 }
 0x306   : > { %952 = vrot.lane.b32.xlu0 %v2377_v30, %s2038_s17 }
 0x308   : > { %1721 = vmatmul.mubr.msk.f32.gmra.mrb[8].mxu1 %vm665_vm8, %v661_v38  ;;  %v878_v38 = vsub.s32 4, %v2314_v41 }
 0x309   : > { %962 = vrot.lane.b32.xlu1 %v2371_v24, %s2038_s17  ;;  %784 = vmatprep.mubr.f32.mxu1 %v2037_v25 }
 0x30a   : > { %954 = vrot.lane.b32.xlu0 %v2379_v31, %s2038_s17 }
 0x30c   : > { %1722 = vmatmul.mubr.msk.f32.gmra.mrb[10].mxu1 %vm665_vm8, %v662_v46  ;;  %v2605_v46 = vsub.s32 3, %v2314_v41 }
 0x30d   : > { %790 = vmatprep.mubr.f32.mxu1 %v2037_v25 }
 0x30e   : > { %3094 = vst [vmem:[#allocation21_spill] sm:$0xff] %v2605_v46 }
 0x310   : > { %1723 = vmatmul.mubr.msk.f32.gmra.mrb[12].mxu1 %vm665_vm8, %v663_v48  ;;  %v998_v48 = vsub.s32 7, %v2314_v41 }
 0x311   : > { %796 = vmatprep.mubr.f32.mxu1 %v2037_v25 }
 0x314   : > { %1724 = vmatmul.mubr.msk.f32.gmra.mrb[14].mxu1 %vm665_vm8, %v664_v50 }
 0x35f   : > { %v927_v52 = vpop.permute.xlu1 %926  ;;  %v925_v53 = vpop.permute.xlu0 %924 }
 0x363   : > { %v935_v55 = vpop.permute.xlu1 %934 }
 0x364   : > { %v2452_v56 = vsel %vm570_vm9, %v927_v52, %v935_v55  ;;  %v2456_v25 = vsel %vm570_vm9, %v935_v55, %v927_v52  ;;  %v933_v57 = vpop.permute.xlu0 %932  ;;  %v2612_v55 = vsub.s32 5, %v2314_v41 }
 0x365   : > { %v2460_v59 = vsel %vm570_vm9, %v925_v53, %v933_v57  ;;  %v2464_v40 = vsel %vm570_vm9, %v933_v57, %v925_v53  ;;  %v2609_v53 = vrot.slane %v2317_v43, %v878_v38  ;;  %v2615_v57 = vrot.slane %v2320_v44, %v878_v38 }
 0x366   : > { %3095 = vst [vmem:[#allocation22_spill] sm:$0xff] %v2612_v55 }
 0x367   : > { %v937_v60 = vpop.permute.xlu1 %936 }
 0x368   : > { %v929_v61 = vpop.permute.xlu0 %928 }
 0x369   : > { %v2468_v62 = vsel %vm570_vm9, %v929_v61, %v937_v60  ;;  %v2472_v63 = vsel %vm570_vm9, %v937_v60, %v929_v61  ;;  %v2619_v60 = vrot.slane %v2317_v43, %v2605_v46  ;;  %v2623_v61 = vrot.slane %v2320_v44, %v2605_v46 }
 0x36b   : > { %v939_v0 = vpop.permute.xlu1 %938 }
 0x36c   : > { %v931_v1 = vpop.permute.xlu0 %930 }
 0x36d   : > { %v2476_v2 = vsel %vm570_vm9, %v931_v1, %v939_v0  ;;  %v2480_v3 = vsel %vm570_vm9, %v939_v0, %v931_v1  ;;  %v2626_v0 = vrot.slane %v2317_v43, %v998_v48  ;;  %v2629_v1 = vsub.s32 6, %v2314_v41 }
 0x36e   : > { %v2642_v41 = vrot.slane %v2317_v43, %v2612_v55 }
 0x36f   : > { %v951_v4 = vpop.permute.xlu1 %950  ;;  %3096 = vst [vmem:[#allocation23_spill] sm:$0xff] %v2629_v1 }
 0x370   : > { %v949_v5 = vpop.permute.xlu0 %948 }
 0x373   : > { %v959_v29 = vpop.permute.xlu1 %958 }
 0x374   : > { %v2485_v6 = vsel %vm843_vm10, %v951_v4, %v959_v29  ;;  %v2489_v7 = vsel %vm843_vm10, %v959_v29, %v951_v4  ;;  %v957_v27 = vpop.permute.xlu0 %956  ;;  %v2632_v4 = vrot.slane %v2320_v44, %v998_v48 }
 0x375   : > { %v2493_v8 = vsel %vm843_vm10, %v949_v5, %v957_v27  ;;  %v2497_v9 = vsel %vm843_vm10, %v957_v27, %v949_v5 }
 0x377   : > { %v2597_v34 = vpop.permute.xlu1 %960 }
 0x378   : > { %v2595_v32 = vpop.permute.xlu0 %952 }
 0x37b   : > { %v2601_v36 = vpop.permute.xlu1 %962 }
 0x37c   : > { %v2599_v35 = vpop.permute.xlu0 %954 }
 0x3cb   : > { %v2499_v10 = vpop.f32.mrb[0].mxu1 }
 0x3cc   : > { %803 = vrot.lane.b32.xlu0 %v2499_v10, %s2036_s21  ;;  %v2503_v11 = vpop.f32.mrb[1].mxu1  ;;  %v884_v27 = vmul.f32 %v2609_v53, %v2499_v10 }
 0x3cd   : > { %v885_v48 = vmul.f32 %v2615_v57, %v2503_v11 }
 0x3cf   : > { %v2505_v12 = vpop.f32.mrb[2].mxu1 }
 0x3d0   : > { %827 = vrot.lane.b32.xlu0 %v2499_v10, %s2038_s17  ;;  %805 = vrot.lane.b32.xlu1 %v2505_v12, %s2036_s21  ;;  %v2511_v13 = vpop.f32.mrb[3].mxu1  ;;  %v2650_v10 = vrot.slane %v2320_v44, %v2612_v55  ;;  %v886_v55 = vmul.f32 %v2609_v53, %v2505_v12 }
 0x3d3   : > { %v2513_v28 = vpop.f32.mrb[4].mxu1 }
 0x3d4   : > { %811 = vrot.lane.b32.xlu0 %v2503_v11, %s2036_s21  ;;  %829 = vrot.lane.b32.xlu1 %v2505_v12, %s2038_s17  ;;  %v2519_v33 = vpop.f32.mrb[5].mxu1 }
 0x3d7   : > { %v2521_v14 = vpop.f32.mrb[6].mxu1 }
 0x3d8   : > { %835 = vrot.lane.b32.xlu0 %v2503_v11, %s2038_s17  ;;  %813 = vrot.lane.b32.xlu1 %v2511_v13, %s2036_s21  ;;  %v2527_v42 = vpop.f32.mrb[7].mxu1  ;;  %v2664_v11 = vrot.slane %v2320_v44, %v2629_v1 }
 0x3db   : > { %v2529_v49 = vpop.f32.mrb[8].mxu1 }
 0x3dc   : > { %3086 = vst [vmem:[#allocation13_spill] sm:$0xff] %v2529_v49  ;;  %837 = vrot.lane.b32.xlu1 %v2511_v13, %s2038_s17  ;;  %807 = vrot.lane.b32.xlu0 %v2513_v28, %s2036_s21  ;;  %v2535_v17 = vpop.f32.mrb[9].mxu1 }
 0x3dd   : > { %3087 = vst [vmem:[#allocation14_spill] sm:$0xff] %v2535_v17 }
 0x3df   : > { %v2537_v18 = vpop.f32.mrb[10].mxu1 }
 0x3e0   : > { %3088 = vst [vmem:[#allocation15_spill] sm:$0xff] %v2537_v18  ;;  %831 = vrot.lane.b32.xlu0 %v2513_v28, %s2038_s17  ;;  %815 = vrot.lane.b32.xlu1 %v2519_v33, %s2036_s21  ;;  %v2543_v19 = vpop.f32.mrb[11].mxu1 }
 0x3e1   : > { %3089 = vst [vmem:[#allocation16_spill] sm:$0xff] %v2543_v19 }
 0x3e3   : > { %v2545_v20 = vpop.f32.mrb[12].mxu1 }
 0x3e4   : > { %3090 = vst [vmem:[#allocation17_spill] sm:$0xff] %v2545_v20  ;;  %839 = vrot.lane.b32.xlu1 %v2519_v33, %s2038_s17  ;;  %809 = vrot.lane.b32.xlu0 %v2521_v14, %s2036_s21  ;;  %v2551_v22 = vpop.f32.mrb[13].mxu1 }
 0x3e5   : > { %3091 = vst [vmem:[#allocation18_spill] sm:$0xff] %v2551_v22 }
 0x3e7   : > { %v2553_v23 = vpop.f32.mrb[14].mxu1 }
 0x3e8   : > { %3092 = vst [vmem:[#allocation19_spill] sm:$0xff] %v2553_v23  ;;  %833 = vrot.lane.b32.xlu0 %v2521_v14, %s2038_s17  ;;  %817 = vrot.lane.b32.xlu1 %v2527_v42, %s2036_s21  ;;  %v2559_v26 = vpop.f32.mrb[15].mxu1 }
 0x3e9   : > { %3093 = vst [vmem:[#allocation20_spill] sm:$0xff] %v2559_v26 }
 0x3ec   : > { %841 = vrot.lane.b32.xlu1 %v2527_v42, %s2038_s17  ;;  %1044 = vrot.lane.b32.xlu0 %v2529_v49, %s2036_s21 }
 0x3f0   : > { %1068 = vrot.lane.b32.xlu0 %v2529_v49, %s2038_s17  ;;  %1046 = vrot.lane.b32.xlu1 %v2537_v18, %s2036_s21 }
 0x3f4   : > { %1052 = vrot.lane.b32.xlu0 %v2535_v17, %s2036_s21  ;;  %1070 = vrot.lane.b32.xlu1 %v2537_v18, %s2038_s17 }
 0x3f8   : > { %1076 = vrot.lane.b32.xlu0 %v2535_v17, %s2038_s17  ;;  %1054 = vrot.lane.b32.xlu1 %v2543_v19, %s2036_s21 }
 0x3fc   : > { %1078 = vrot.lane.b32.xlu1 %v2543_v19, %s2038_s17  ;;  %1048 = vrot.lane.b32.xlu0 %v2545_v20, %s2036_s21 }
 0x400   : > { %1072 = vrot.lane.b32.xlu0 %v2545_v20, %s2038_s17  ;;  %1056 = vrot.lane.b32.xlu1 %v2551_v22, %s2036_s21  ;;  %v2654_v20 = vmul.f32 %v2626_v0, %v2351_v15  ;;  %v887_v15 = vmul.f32 %v2615_v57, %v2511_v13 }
 0x404   : > { %1080 = vrot.lane.b32.xlu1 %v2551_v22, %s2038_s17  ;;  %1050 = vrot.lane.b32.xlu0 %v2553_v23, %s2036_s21 }
 0x408   : > { %1074 = vrot.lane.b32.xlu0 %v2553_v23, %s2038_s17  ;;  %1058 = vrot.lane.b32.xlu1 %v2559_v26, %s2036_s21 }
 0x40c   : > { %1082 = vrot.lane.b32.xlu1 %v2559_v26, %s2038_s17 }
 0x43e   : > { %v804_v37 = vpop.permute.xlu0 %803 }
 0x442   : > { %v828_v50 = vpop.permute.xlu0 %827  ;;  %v806_v52 = vpop.permute.xlu1 %805 }
 0x446   : > { %v812_v5 = vpop.permute.xlu0 %811  ;;  %v830_v29 = vpop.permute.xlu1 %829 }
 0x447   : > { %v819_v38 = vsel %vm570_vm9, %v804_v37, %v812_v5  ;;  %v823_v26 = vsel %vm570_vm9, %v812_v5, %v804_v37  ;;  %v1004_v37 = vmul.f32 %v2626_v0, %v2353_v39  ;;  %v2660_v5 = vrot.slane %v2317_v43, %v2629_v1 }
 0x448   : > { %v860_v23 = vmul.f32 %v2619_v60, %v823_v26  ;;  %v861_v22 = vmul.f32 %v2623_v61, %v819_v38  ;;  %v2667_v26 = vld [vmem:[%s2230_s13 + $0x10] sm:$0x7f]  ;;  %v2670_v38 = vld [vmem:[%s2230_s13 + $0x18] sm:$0x7f]  ;;  %s2040_s13 = smov [#allocation7]  }
 0x449   : > { %3097 = vst [vmem:[#allocation24_spill] sm:$0xff] %v2670_v38 }
 0x44a   : > { %v892_v19 = vadd.f32 %v884_v27, %v860_v23  ;;  %v893_v39 = vadd.f32 %v885_v48, %v861_v22  ;;  %v836_v18 = vpop.permute.xlu0 %835  ;;  %v814_v17 = vpop.permute.xlu1 %813  ;;  %v980_v27 = vmul.f32 %v2660_v5, %v2464_v40  ;;  %v1005_v40 = vmul.f32 %v2632_v4, %v2359_v45 }
 0x44b   : > { %v844_v43 = vsel %vm843_vm10, %v828_v50, %v836_v18  ;;  %v848_v44 = vsel %vm843_vm10, %v836_v18, %v828_v50  ;;  %v820_v1 = vsel %vm570_vm9, %v806_v52, %v814_v17  ;;  %v824_v49 = vsel %vm570_vm9, %v814_v17, %v806_v52 }
 0x44c   : > { %v908_v12 = vmul.f32 %v2642_v41, %v844_v43  ;;  %v909_v13 = vmul.f32 %v2650_v10, %v848_v44  ;;  %v862_v22 = vmul.f32 %v2619_v60, %v824_v49  ;;  %v863_v23 = vmul.f32 %v2623_v61, %v820_v1 }
 0x44d   : > { %v981_v18 = vmul.f32 %v2664_v11, %v2460_v59  ;;  %v2694_v50 = vrot.slane %v2667_v26, %v2323_v47  ;;  %v2698_v17 = vrot.slane %v2670_v38, %v2323_v47  ;;  %v1007_v59 = vmul.f32 %v2632_v4, %v2361_v16 }
 0x44e   : > { %v916_v52 = vadd.f32 %v908_v12, %v892_v19  ;;  %v917_v48 = vadd.f32 %v909_v13, %v893_v39  ;;  %v894_v43 = vadd.f32 %v886_v55, %v862_v22  ;;  %v895_v49 = vadd.f32 %v887_v15, %v863_v23  ;;  %v838_v44 = vpop.permute.xlu1 %837  ;;  %v808_v1 = vpop.permute.xlu0 %807 }
 0x44f   : > { %v845_v46 = vsel %vm843_vm10, %v830_v29, %v838_v44  ;;  %v849_v54 = vsel %vm843_vm10, %v838_v44, %v830_v29  ;;  %v982_v15 = vmul.f32 %v2660_v5, %v2456_v25  ;;  %v983_v45 = vmul.f32 %v2664_v11, %v2452_v56 }
 0x450   : > { %v988_v47 = vadd.f32 %v980_v27, %v916_v52  ;;  %v989_v38 = vadd.f32 %v981_v18, %v917_v48  ;;  %v910_v19 = vmul.f32 %v2642_v41, %v845_v46  ;;  %v911_v55 = vmul.f32 %v2650_v10, %v849_v54 }
 0x451   : > { %v1028_v16 = vmul.f32 %v2694_v50, %v2493_v8  ;;  %v1029_v39 = vmul.f32 %v2698_v17, %v2497_v9  ;;  %v888_v54 = vmul.f32 %v2609_v53, %v2513_v28  ;;  %v889_v25 = vmul.f32 %v2615_v57, %v2519_v33 }
 0x452   : > { %v918_v12 = vadd.f32 %v910_v19, %v894_v43  ;;  %v919_v29 = vadd.f32 %v911_v55, %v895_v49  ;;  %v832_v13 = vpop.permute.xlu0 %831  ;;  %v816_v22 = vpop.permute.xlu1 %815  ;;  %v1012_v23 = vadd.f32 %v1004_v37, %v988_v47  ;;  %v1013_v46 = vadd.f32 %v1005_v40, %v989_v38 }
 0x453   : > { %v821_v56 = vsel %vm570_vm9, %v808_v1, %v816_v22  ;;  %v825_v8 = vsel %vm570_vm9, %v816_v22, %v808_v1  ;;  %v1030_v47 = vmul.f32 %v2694_v50, %v2485_v6  ;;  %v1031_v28 = vmul.f32 %v2698_v17, %v2489_v7 }
 0x454   : > { %v990_v27 = vadd.f32 %v982_v15, %v918_v12  ;;  %v991_v9 = vadd.f32 %v983_v45, %v919_v29  ;;  %v864_v18 = vmul.f32 %v2619_v60, %v825_v8  ;;  %v865_v52 = vmul.f32 %v2623_v61, %v821_v56 }
 0x455   : > { %v2732_v37 = vadd.f32 %v1028_v16, %v1012_v23  ;;  %v2734_v33 = vadd.f32 %v1029_v39, %v1013_v46  ;;  %v984_v45 = vmul.f32 %v2660_v5, %v2472_v63  ;;  %v1009_v16 = vmul.f32 %v2632_v4, %v2367_v21 }
 0x456   : > { %v896_v38 = vadd.f32 %v888_v54, %v864_v18  ;;  %v897_v48 = vadd.f32 %v889_v25, %v865_v52  ;;  %v840_v43 = vpop.permute.xlu1 %839  ;;  %v810_v49 = vpop.permute.xlu0 %809  ;;  %v1014_v44 = vadd.f32 %v2654_v20, %v990_v27  ;;  %v1015_v1 = vadd.f32 %v1007_v59, %v991_v9 }
 0x457   : > { %v846_v40 = vsel %vm843_vm10, %v832_v13, %v840_v43  ;;  %v850_v6 = vsel %vm843_vm10, %v840_v43, %v832_v13  ;;  %v985_v20 = vmul.f32 %v2664_v11, %v2468_v62  ;;  %v1008_v59 = vmul.f32 %v2626_v0, %v2377_v30 }
 0x458   : > { %v912_v19 = vmul.f32 %v2642_v41, %v846_v40  ;;  %v913_v7 = vmul.f32 %v2650_v10, %v850_v6  ;;  %v2743_v55 = vadd.f32 %v1030_v47, %v1014_v44  ;;  %v2745_v15 = vadd.f32 %v1031_v28, %v1015_v1  ;;  %v3098_v40 = vld [vmem:[#allocation24_spill] sm:$0xff] }
 0x459   : > { %v966_v39 = vsel %vm843_vm10, %v2595_v32, %v2597_v34  ;;  %v970_v12 = vsel %vm843_vm10, %v2597_v34, %v2595_v32  ;;  %v890_v30 = vmul.f32 %v2609_v53, %v2521_v14  ;;  %v891_v21 = vmul.f32 %v2615_v57, %v2527_v42 }
 0x45a   : > { %v920_v63 = vadd.f32 %v912_v19, %v896_v38  ;;  %v921_v29 = vadd.f32 %v913_v7, %v897_v48  ;;  %v834_v13 = vpop.permute.xlu0 %833  ;;  %v818_v62 = vpop.permute.xlu1 %817  ;;  %v1032_v25 = vmul.f32 %v2694_v50, %v966_v39  ;;  %v1033_v56 = vmul.f32 %v2698_v17, %v970_v12  ;;  %v3099_v19 = vld [vmem:[#allocation12_spill] sm:$0xff] }
 0x45b   : > { %v822_v22 = vsel %vm570_vm9, %v810_v49, %v818_v62  ;;  %v826_v23 = vsel %vm570_vm9, %v818_v62, %v810_v49  ;;  %v986_v28 = vmul.f32 %v2660_v5, %v2480_v3  ;;  %v987_v38 = vmul.f32 %v2664_v11, %v2476_v2 }
 0x45c   : > { %v992_v46 = vadd.f32 %v984_v45, %v920_v63  ;;  %v993_v54 = vadd.f32 %v985_v20, %v921_v29  ;;  %v866_v32 = vmul.f32 %v2619_v60, %v826_v23  ;;  %v867_v34 = vmul.f32 %v2623_v61, %v822_v22 }
 0x45d   : > { %v1010_v3 = vmul.f32 %v2626_v0, %v2379_v31  ;;  %v1011_v2 = vmul.f32 %v2632_v4, %v2371_v24  ;;  %v2803_v1 = vrot.slane %v2667_v26, %v2333_v58  ;;  %v2807_v6 = vrot.slane %v3098_v40, %v2333_v58 }
 0x45e   : > { %v898_v14 = vadd.f32 %v890_v30, %v866_v32  ;;  %v899_v53 = vadd.f32 %v891_v21, %v867_v34  ;;  %v842_v8 = vpop.permute.xlu1 %841  ;;  %v1045_v42 = vpop.permute.xlu0 %1044  ;;  %v1016_v57 = vadd.f32 %v1008_v59, %v992_v46  ;;  %v1017_v27 = vadd.f32 %v1009_v16, %v993_v54  ;;  %v3100_v16 = vld [vmem:[#allocation21_spill] sm:$0xff]  ;;  %v3102_v30 = vld [vmem:[#allocation14_spill] sm:$0xff] }
 0x45f   : > { %v847_v9 = vsel %vm843_vm10, %v834_v13, %v842_v8  ;;  %v851_v18 = vsel %vm843_vm10, %v842_v8, %v834_v13  ;;  %v2811_v7 = vrot.slane %v2667_v26, %v3099_v19  ;;  %v2815_v31 = vrot.slane %v3098_v40, %v3099_v19  ;;  %v3101_v13 = vld [vmem:[#allocation13_spill] sm:$0xff] }
 0x460   : > { %v914_v60 = vmul.f32 %v2642_v41, %v847_v9  ;;  %v915_v61 = vmul.f32 %v2650_v10, %v851_v18  ;;  %v2781_v52 = vadd.f32 %v1032_v25, %v1016_v57  ;;  %v2783_v47 = vadd.f32 %v1033_v56, %v1017_v27  ;;  %v3103_v57 = vld [vmem:[#allocation15_spill] sm:$0xff]  ;;  %v3104_v9 = vld [vmem:[#allocation16_spill] sm:$0xff] }
 0x461   : > { %v967_v41 = vsel %vm843_vm10, %v2599_v35, %v2601_v36  ;;  %v971_v10 = vsel %vm843_vm10, %v2601_v36, %v2599_v35  ;;  %v2825_v39 = vrot.slane %v2667_v26, %v3100_v16  ;;  %v2829_v12 = vrot.slane %v3098_v40, %v3100_v16 }
 0x462   : > { %v922_v48 = vadd.f32 %v914_v60, %v898_v14  ;;  %v923_v43 = vadd.f32 %v915_v61, %v899_v53  ;;  %v1069_v49 = vpop.permute.xlu0 %1068  ;;  %v1047_v44 = vpop.permute.xlu1 %1046  ;;  %v1034_v24 = vmul.f32 %v2694_v50, %v967_v41  ;;  %v1035_v35 = vmul.f32 %v2698_v17, %v971_v10 }
 0x463   : > { %v1124_v62 = vmul.f32 %v2811_v7, %v3101_v13  ;;  %v1125_v21 = vmul.f32 %v2815_v31, %v3102_v30  ;;  %v1126_v27 = vmul.f32 %v2811_v7, %v3103_v57  ;;  %v1127_v18 = vmul.f32 %v2815_v31, %v3104_v9 }
 0x464   : > { %v994_v5 = vadd.f32 %v986_v28, %v922_v48  ;;  %v995_v11 = vadd.f32 %v987_v38, %v923_v43 }
 0x466   : > { %v1053_v36 = vpop.permute.xlu0 %1052  ;;  %v1071_v0 = vpop.permute.xlu1 %1070  ;;  %v1018_v4 = vadd.f32 %v1010_v3, %v994_v5  ;;  %v1019_v45 = vadd.f32 %v1011_v2, %v995_v11 }
 0x467   : > { %v1060_v20 = vsel %vm570_vm9, %v1045_v42, %v1053_v36  ;;  %v1064_v59 = vsel %vm570_vm9, %v1053_v36, %v1045_v42 }
 0x468   : > { %v1100_v50 = vmul.f32 %v2803_v1, %v1064_v59  ;;  %v1101_v17 = vmul.f32 %v2807_v6, %v1060_v20  ;;  %v2833_v63 = vadd.f32 %v1034_v24, %v1018_v4  ;;  %v2835_v29 = vadd.f32 %v1035_v35, %v1019_v45  ;;  %v3106_v45 = vld [vmem:[#allocation18_spill] sm:$0xff] }
 0x469   : > { %v1129_v20 = vmul.f32 %v2815_v31, %v3106_v45 }
 0x46a   : > { %v1108_v22 = vadd.f32 %v1100_v50, %v2732_v37  ;;  %v1109_v23 = vadd.f32 %v1101_v17, %v2734_v33  ;;  %v1077_v46 = vpop.permute.xlu0 %1076  ;;  %v1055_v54 = vpop.permute.xlu1 %1054 }
 0x46b   : > { %v1084_v32 = vsel %vm843_vm10, %v1069_v49, %v1077_v46  ;;  %v1088_v34 = vsel %vm843_vm10, %v1077_v46, %v1069_v49  ;;  %v1061_v25 = vsel %vm570_vm9, %v1047_v44, %v1055_v54  ;;  %v1065_v56 = vsel %vm570_vm9, %v1055_v54, %v1047_v44 }
 0x46c   : > { %v1132_v14 = vadd.f32 %v1124_v62, %v1108_v22  ;;  %v1133_v53 = vadd.f32 %v1125_v21, %v1109_v23  ;;  %v1148_v37 = vmul.f32 %v2825_v39, %v1084_v32  ;;  %v1149_v33 = vmul.f32 %v2829_v12, %v1088_v34  ;;  %v3107_v34 = vld [vmem:[#allocation19_spill] sm:$0xff] }
 0x46d   : > { %v1102_v8 = vmul.f32 %v2803_v1, %v1065_v56  ;;  %v1103_v42 = vmul.f32 %v2807_v6, %v1061_v25  ;;  %v1130_v25 = vmul.f32 %v2811_v7, %v3107_v34  ;;  %v3108_v56 = vld [vmem:[#allocation20_spill] sm:$0xff] }
 0x46e   : > { %v2859_v60 = vadd.f32 %v1148_v37, %v1132_v14  ;;  %v2861_v61 = vadd.f32 %v1149_v33, %v1133_v53  ;;  %v1079_v28 = vpop.permute.xlu1 %1078  ;;  %v1049_v38 = vpop.permute.xlu0 %1048  ;;  %v1131_v14 = vmul.f32 %v2815_v31, %v3108_v56 }
 0x46f   : > { %v1110_v48 = vadd.f32 %v1102_v8, %v2743_v55  ;;  %v1111_v43 = vadd.f32 %v1103_v42, %v2745_v15  ;;  %v1085_v49 = vsel %vm843_vm10, %v1071_v0, %v1079_v28  ;;  %v1089_v44 = vsel %vm843_vm10, %v1079_v28, %v1071_v0  ;;  %v3105_v0 = vld [vmem:[#allocation17_spill] sm:$0xff] }
 0x470   : > { %v1150_v41 = vmul.f32 %v2825_v39, %v1085_v49  ;;  %v1151_v10 = vmul.f32 %v2829_v12, %v1089_v44  ;;  %v1128_v4 = vmul.f32 %v2811_v7, %v3105_v0  ;;  %v1182_v33 = vmul.f32 %v2859_v60, %v2859_v60 }
 0x471   : > { %v1134_v3 = vadd.f32 %v1126_v27, %v1110_v48  ;;  %v1135_v2 = vadd.f32 %v1127_v18, %v1111_v43  ;;  %v1183_v8 = vmul.f32 %v2861_v61, %v2861_v61 }
 0x472   : > { %v1073_v5 = vpop.permute.xlu0 %1072  ;;  %v1057_v11 = vpop.permute.xlu1 %1056 }
 0x473   : > { %v2871_v19 = vadd.f32 %v1150_v41, %v1134_v3  ;;  %v2873_v24 = vadd.f32 %v1151_v10, %v1135_v2  ;;  %v1062_v55 = vsel %vm570_vm9, %v1049_v38, %v1057_v11  ;;  %v1066_v15 = vsel %vm570_vm9, %v1057_v11, %v1049_v38 }
 0x474   : > { %v1104_v35 = vmul.f32 %v2803_v1, %v1066_v15  ;;  %v1105_v36 = vmul.f32 %v2807_v6, %v1062_v55 }
 0x475   : > { %v1184_v42 = vmul.f32 %v2871_v19, %v2871_v19  ;;  %v1185_v57 = vmul.f32 %v2873_v24, %v2873_v24 }
 0x476   : > { %v1112_v59 = vadd.f32 %v1104_v35, %v2781_v52  ;;  %v1113_v16 = vadd.f32 %v1105_v36, %v2783_v47  ;;  %v1081_v50 = vpop.permute.xlu1 %1080  ;;  %v1051_v23 = vpop.permute.xlu0 %1050 }
 0x477   : > { %v1086_v17 = vsel %vm843_vm10, %v1073_v5, %v1081_v50  ;;  %v1090_v13 = vsel %vm843_vm10, %v1081_v50, %v1073_v5  ;;  %v1190_v51 = vadd.f32 %v1184_v42, %v1182_v33  ;;  %v1199_v44 = vadd.f32 %v1185_v57, %v1183_v8 }
 0x478   : > { %v1136_v62 = vadd.f32 %v1128_v4, %v1112_v59  ;;  %v1137_v30 = vadd.f32 %v1129_v20, %v1113_v16  ;;  %v1152_v21 = vmul.f32 %v2825_v39, %v1086_v17  ;;  %v1153_v22 = vmul.f32 %v2829_v12, %v1090_v13 }
 0x47a   : > { %v2893_v46 = vadd.f32 %v1152_v21, %v1136_v62  ;;  %v2895_v54 = vadd.f32 %v1153_v22, %v1137_v30  ;;  %v1059_v52 = vpop.permute.xlu1 %1058  ;;  %v1075_v7 = vpop.permute.xlu0 %1074 }
 0x47b   : > { %v1063_v47 = vsel %vm570_vm9, %v1051_v23, %v1059_v52  ;;  %v1067_v32 = vsel %vm570_vm9, %v1059_v52, %v1051_v23 }
 0x47c   : > { %v1106_v53 = vmul.f32 %v2803_v1, %v1067_v32  ;;  %v1107_v37 = vmul.f32 %v2807_v6, %v1063_v47  ;;  %v1186_v18 = vmul.f32 %v2893_v46, %v2893_v46  ;;  %v1187_v28 = vmul.f32 %v2895_v54, %v2895_v54 }
 0x47e   : > { %v1083_v27 = vpop.permute.xlu1 %1082  ;;  %v1114_v31 = vadd.f32 %v1106_v53, %v2833_v63  ;;  %v1115_v1 = vadd.f32 %v1107_v37, %v2835_v29  ;;  %v1164_v63 = vadd.f32 %v2871_v19, %v2859_v60  ;;  %v1173_v29 = vadd.f32 %v2873_v24, %v2861_v61 }
 0x47f   : > { %v1087_v6 = vsel %vm843_vm10, %v1075_v7, %v1083_v27  ;;  %v1091_v9 = vsel %vm843_vm10, %v1083_v27, %v1075_v7 }
 0x480   : > { %v1154_v38 = vmul.f32 %v2825_v39, %v1087_v6  ;;  %v1155_v48 = vmul.f32 %v2829_v12, %v1091_v9  ;;  %v1138_v43 = vadd.f32 %v1130_v25, %v1114_v31  ;;  %v1139_v49 = vadd.f32 %v1131_v14, %v1115_v1  ;;  %v1871_v1 = vld [vmem:[%s2219_s15 + $0x40] sm:$0xff]  }
 0x481   : > { %v1165_v41 = vadd.f32 %v1164_v63, %v2893_v46  ;;  %v1174_v10 = vadd.f32 %v1173_v29, %v2895_v54  ;;  %v1191_v39 = vadd.f32 %v1190_v51, %v1186_v18  ;;  %v1200_v12 = vadd.f32 %v1199_v44, %v1187_v28  ;;  %v1872_v9 = vld [vmem:[%s2219_s15] sm:$0xff]   ;;  %1748 = vmatprep.subr.bf16.mxu1 %v1871_v1  ;;  %v1874_v63 = vld [vmem:[%s2219_s15 + $0x8] sm:$0xff]   ;;  %v1875_v29 = vld [vmem:[%s2219_s15 + $0x50] sm:$0xff]  }
 0x482   : > { %v2933_v3 = vadd.f32 %v1154_v38, %v1138_v43  ;;  %v2935_v2 = vadd.f32 %v1155_v48, %v1139_v49  ;;  %1749 = vmatpush3.bf16.msra.mxu1 %v1872_v9  ;;  %v1873_v48 = vld [vmem:[%s2219_s15 + $0x48] sm:$0xff]   ;;  %v1876_v43 = vld [vmem:[%s2219_s15 + $0x10] sm:$0xff]   ;;  %v1877_v49 = vld [vmem:[%s2219_s15 + $0x58] sm:$0xff]  }
 0x483   : > { %1750 = vmatprep.subr.bf16.mxu1 %v1873_v48  ;;  %v1878_v51 = vld [vmem:[%s2219_s15 + $0x18] sm:$0xff]   ;;  %v1879_v44 = vld [vmem:[%s2219_s15 + $0x60] sm:$0xff]  }
 0x484   : > { %v1166_v5 = vadd.f32 %v1165_v41, %v2933_v3  ;;  %v1175_v11 = vadd.f32 %v1174_v10, %v2935_v2  ;;  %v1188_v55 = vmul.f32 %v2933_v3, %v2933_v3  ;;  %v1189_v15 = vmul.f32 %v2935_v2, %v2935_v2  ;;  %v1880_v41 = vld [vmem:[%s2219_s15 + $0x20] sm:$0xff]   ;;  %v1881_v10 = vld [vmem:[%s2219_s15 + $0x68] sm:$0xff]  }
 0x486   : > { %v1167_v35 = vrot.slane %v1166_v5, 4  ;;  %v1176_v36 = vrot.slane %v1175_v11, 4  ;;  %v1192_v0 = vadd.f32 %v1191_v39, %v1188_v55  ;;  %v1201_v4 = vadd.f32 %v1200_v12, %v1189_v15  ;;  %1751 = vmatpush3.bf16.msra.mxu1 %v1874_v63  ;;  %v1882_v39 = vld [vmem:[%s2219_s15 + $0x28] sm:$0xff]   ;;  %v1883_v12 = vld [vmem:[%s2219_s15 + $0x70] sm:$0xff]   ;;  %v1886_v55 = vld [vmem:[%s2219_s15 + $0x38] sm:$0xff]  }
 0x487   : > { %1752 = vmatprep.subr.bf16.mxu1 %v1875_v29 }
 0x488   : > { %v1168_v45 = vadd.f32 %v1167_v35, %v1166_v5  ;;  %v1177_v20 = vadd.f32 %v1176_v36, %v1175_v11  ;;  %v1193_v59 = vrot.slane %v1192_v0, 4  ;;  %v1202_v16 = vrot.slane %v1201_v4, 4  ;;  %v1884_v5 = vld [vmem:[%s2219_s15 + $0x30] sm:$0xff]   ;;  %v1885_v11 = vld [vmem:[%s2219_s15 + $0x78] sm:$0xff]   ;;  %s2039_s15 = smov 8  }
 0x48a   : > { %v1169_v50 = vrot.slane %v1168_v45, 2  ;;  %v1178_v17 = vrot.slane %v1177_v20, 2  ;;  %v1194_v13 = vadd.f32 %v1193_v59, %v1192_v0  ;;  %v1203_v62 = vadd.f32 %v1202_v16, %v1201_v4  ;;  %1753 = vmatpush3.bf16.msra.mxu1 %v1876_v43 }
 0x48b   : > { %1754 = vmatprep.subr.bf16.mxu1 %v1877_v49 }
 0x48c   : > { %v1170_v30 = vadd.f32 %v1169_v50, %v1168_v45  ;;  %v1179_v21 = vadd.f32 %v1178_v17, %v1177_v20  ;;  %v1195_v22 = vrot.slane %v1194_v13, 2  ;;  %v1204_v23 = vrot.slane %v1203_v62, 2 }
 0x48d   : > { %v1236_v50 = vrot.slane %v2667_v26, 4  ;;  %v1237_v17 = vrot.slane %v3098_v40, 4 }
 0x48e   : > { %v1171_v52 = vrot.slane %v1170_v30, 1  ;;  %v1180_v47 = vrot.slane %v1179_v21, 1  ;;  %v1196_v32 = vadd.f32 %v1195_v22, %v1194_v13  ;;  %v1205_v34 = vadd.f32 %v1204_v23, %v1203_v62  ;;  %1755 = vmatpush3.bf16.msra.mxu1 %v1878_v51  ;;  %v3109_v23 = vld [vmem:[#allocation11_spill] sm:$0xff] }
 0x48f   : > { %1756 = vmatprep.subr.bf16.mxu1 %v1879_v44 }
 0x490   : > { %v1172_v25 = vadd.f32 %v1171_v52, %v1170_v30  ;;  %v1181_v56 = vadd.f32 %v1180_v47, %v1179_v21  ;;  %v1197_v14 = vrot.slane %v1196_v32, 1  ;;  %v1206_v53 = vrot.slane %v1205_v34, 1 }
 0x492   : > { %v1208_v37 = vadd.f32 %v1181_v56, %v1172_v25  ;;  %v1198_v33 = vadd.f32 %v1197_v14, %v1196_v32  ;;  %v1207_v8 = vadd.f32 %v1206_v53, %v1205_v34  ;;  %1757 = vmatpush3.bf16.msra.mxu1 %v1880_v41 }
 0x493   : > { %1758 = vmatprep.subr.bf16.mxu1 %v1881_v10 }
 0x494   : > { %1210 = vrot.lane.b32.xlu0 %v1208_v37, %s2034_s16  ;;  %v1209_v42 = vadd.f32 %v1207_v8, %v1198_v33 }
 0x496   : > { %1213 = vrot.lane.b32.xlu1 %v1209_v42, %s2034_s16  ;;  %1759 = vmatpush3.bf16.msra.mxu1 %v1882_v39 }
 0x497   : > { %1760 = vmatprep.subr.bf16.mxu1 %v1883_v12 }
 0x49a   : > { %1761 = vmatpush3.bf16.msra.mxu1 %v1884_v5 }
 0x49b   : > { %1762 = vmatprep.subr.bf16.mxu1 %v1885_v11 }
 0x49e   : > { %1763 = vmatpush3.bf16.msra.mxu1 %v1886_v55 }
 0x506   : > { %v1211_v57 = vpop.permute.xlu0 %1210 }
 0x507   : > { %v1212_v7 = vadd.f32 %v1211_v57, %v1208_v37  ;;  %v3110_v37 = vld [vmem:[#allocation23_spill] sm:$0xff] }
 0x508   : > { %v1214_v27 = vpop.permute.xlu1 %1213  ;;  %v1299_v33 = vrot.slane %v3098_v40, %v3110_v37  ;;  %v1295_v8 = vrot.slane %v2667_v26, %v3110_v37 }
 0x509   : > { %v1215_v31 = vadd.f32 %v1214_v27, %v1209_v42  ;;  %1216 = vrot.lane.b32.xlu0 %v1212_v7, %s2035_s7  ;;  %v3111_v42 = vld [vmem:[#allocation22_spill] sm:$0xff] }
 0x50b   : > { %1219 = vrot.lane.b32.xlu1 %v1215_v31, %s2035_s7 }
 0x57b   : > { %v1217_v6 = vpop.permute.xlu0 %1216 }
 0x57c   : > { %v1218_v18 = vadd.f32 %v1217_v6, %v1212_v7 }
 0x57d   : > { %v1220_v28 = vpop.permute.xlu1 %1219 }
 0x57e   : > { %v1221_v38 = vadd.f32 %v1220_v28, %v1215_v31  ;;  %1222 = vrot.lane.b32.xlu0 %v1218_v18, %s2036_s21 }
 0x580   : > { %1225 = vrot.lane.b32.xlu1 %v1221_v38, %s2036_s21 }
 0x5f0   : > { %v1223_v15 = vpop.permute.xlu0 %1222 }
 0x5f1   : > { %v1224_v35 = vadd.f32 %v1223_v15, %v1218_v18 }
 0x5f2   : > { %v1226_v36 = vpop.permute.xlu1 %1225 }
 0x5f3   : > { %v1228_v0 = vmul.f32 0.001953125, %v1224_v35  ;;  %v1227_v4 = vadd.f32 %v1226_v36, %v1221_v38 }
 0x5f5   : > { %v1229_v45 = vmul.f32 0.001953125, %v1227_v4  ;;  %v1230_v20 = vmul.f32 %v1228_v0, %v1228_v0 }
 0x5f7   : > { %v1231_v59 = vsub.f32 %v1229_v45, %v1230_v20 }
 0x5f9   : > { %v1232_v16 = vadd.f32 1e-05, %v1231_v59 }
 0x5fb   : > { %1889 = vrsqrt.f32 %v1232_v16 }
 0x605   : > { %v1890_v13 = vpop.eup %1889 }
 0x606   : > { %v1240_v62 = vmul.f32 %v1890_v13, %v1236_v50  ;;  %v1241_v30 = vmul.f32 %v1890_v13, %v1237_v17 }
 0x608   : > { %v1242_v21 = vmul.f32 %v1240_v62, %v1228_v0  ;;  %v1243_v22 = vmul.f32 %v1241_v30, %v1228_v0  ;;  %v1259_v52 = vrot.slane %v1241_v30, %v3109_v23  ;;  %v1255_v34 = vrot.slane %v1240_v62, %v3109_v23 }
 0x60a   : > { %v1246_v47 = vrot.slane %v1242_v21, 3  ;;  %v1247_v32 = vrot.slane %v1243_v22, 3  ;;  %v1261_v14 = vmul.f32 %v1259_v52, %v2861_v61  ;;  %v1263_v53 = vmul.f32 %v1259_v52, %v2873_v24 }
 0x60b   : > { %v1260_v27 = vmul.f32 %v1255_v34, %v2859_v60  ;;  %v1262_v31 = vmul.f32 %v1255_v34, %v2871_v19  ;;  %v1265_v1 = vmul.f32 %v1259_v52, %v2895_v54  ;;  %v1267_v61 = vmul.f32 %v1259_v52, %v2935_v2 }
 0x60c   : > { %v1250_v25 = vsub.f32 %v2667_v26, %v1246_v47  ;;  %v1251_v56 = vsub.f32 %v3098_v40, %v1247_v32  ;;  %v1264_v24 = vmul.f32 %v1255_v34, %v2893_v46  ;;  %v1266_v6 = vmul.f32 %v1255_v34, %v2933_v3 }
 0x60e   : > { %v1271_v57 = vrot.slane %v1250_v25, %v3111_v42  ;;  %v1275_v7 = vrot.slane %v1251_v56, %v3111_v42 }
 0x610   : > { %v1277_v40 = vadd.f32 %v1275_v7, %v1261_v14  ;;  %v1279_v9 = vadd.f32 %v1275_v7, %v1263_v53  ;;  %v1276_v18 = vadd.f32 %v1271_v57, %v1260_v27  ;;  %v1278_v26 = vadd.f32 %v1271_v57, %v1262_v31 }
 0x611   : > { %v1281_v28 = vadd.f32 %v1275_v7, %v1265_v1  ;;  %v1283_v38 = vadd.f32 %v1275_v7, %v1267_v61  ;;  %v1280_v48 = vadd.f32 %v1271_v57, %v1264_v24  ;;  %v1282_v63 = vadd.f32 %v1271_v57, %v1266_v6 }
 0x612   : > { %vm1285_vm11 = vcmp.ge.f32.partialorder %v1277_v40, 0.0  ;;  %vm1287_vm12 = vcmp.ge.f32.partialorder %v1279_v9, 0.0  ;;  %v1301_v60 = vmul.f32 %v1299_v33, %v1277_v40  ;;  %v1303_v19 = vmul.f32 %v1299_v33, %v1279_v9 }
 0x613   : > { %vm1284_vm13 = vcmp.ge.f32.partialorder %v1276_v18, 0.0  ;;  %vm1286_vm14 = vcmp.ge.f32.partialorder %v1278_v26, 0.0  ;;  %v1300_v54 = vmul.f32 %v1295_v8, %v1276_v18  ;;  %v1302_v2 = vmul.f32 %v1295_v8, %v1278_v26 }
 0x614   : > { %v1309_v29 = vsel %vm1285_vm11, %v1277_v40, %v1301_v60  ;;  %v1311_v46 = vsel %vm1287_vm12, %v1279_v9, %v1303_v19  ;;  %vm1289_vm15 = vcmp.ge.f32.partialorder %v1281_v28, 0.0  ;;  %vm1291_vm0 = vcmp.ge.f32.partialorder %v1283_v38, 0.0 }
 0x615   : > { %v1317_v3 = vpack.c.bf16 %v1311_v46, %v1309_v29  ;;  %v1308_v43 = vsel %vm1284_vm13, %v1276_v18, %v1300_v54  ;;  %v1310_v49 = vsel %vm1286_vm14, %v1278_v26, %v1302_v2  ;;  %v1305_v51 = vmul.f32 %v1299_v33, %v1281_v28 }
 0x616   : > { %v1316_v44 = vpack.c.bf16 %v1310_v49, %v1308_v43  ;;  %v1307_v41 = vmul.f32 %v1299_v33, %v1283_v38  ;;  %v1304_v39 = vmul.f32 %v1295_v8, %v1280_v48  ;;  %v1306_v12 = vmul.f32 %v1295_v8, %v1282_v63 }
 0x617   : > { %1480 = vmatprep.mubr.bf16.mxu1 %v1317_v3  ;;  %v1313_v10 = vsel %vm1289_vm15, %v1281_v28, %v1305_v51  ;;  %vm1288_vm1 = vcmp.ge.f32.partialorder %v1280_v48, 0.0  ;;  %vm1290_vm2 = vcmp.ge.f32.partialorder %v1282_v63, 0.0 }
 0x618   : > { %1481 = vmatmul.mubr.bf16.vlgmr.msra.gmra.mrb[16].mxu1 %v1316_v44  ;;  %v1315_v5 = vsel %vm1291_vm0, %v1283_v38, %v1307_v41  ;;  %v1312_v55 = vsel %vm1288_vm1, %v1280_v48, %v1304_v39  ;;  %v1314_v15 = vsel %vm1290_vm2, %v1282_v63, %v1306_v12  ;;  %v352_v39 = vld [vmem:[%s2235_s18] sm:$0x3] }
 0x619   : > { %v1319_v11 = vpack.c.bf16 %v1315_v5, %v1313_v10  ;;  %v1318_v35 = vpack.c.bf16 %v1314_v15, %v1312_v55 }
 0x61b   : > { %1488 = vmatprep.mubr.bf16.mxu1 %v1319_v11 }
 0x620   : > { %1489 = vmatmul.mubr.bf16.gmra.mrb[20].mxu1 %v1318_v35 }
 0x6eb   : > { %v1764_v36 = vpop.f32.mrb[16].mxu1 }
 0x6ec   : > { %v1765_v0 = vpop.f32.mrb[17].mxu1 }
 0x6ed   : > { %v2985_v4 = vadd.f32 %v1765_v0, %v1764_v36  ;;  %v1767_v45 = vpop.f32.mrb[18].mxu1 }
 0x6ee   : > { %v1768_v20 = vpop.f32.mrb[19].mxu1 }
 0x6ef   : > { %v2987_v59 = vadd.f32 %v1768_v20, %v1767_v45  ;;  %v1506_v13 = vmul.f32 %v2985_v4, %v2985_v4 }
 0x6f1   : > { %v1507_v16 = vmul.f32 %v2987_v59, %v2987_v59  ;;  %v1497_v62 = vadd.f32 %v2987_v59, %v2985_v4 }
 0x6f3   : > { %v1770_v50 = vpop.f32.mrb[20].mxu1  ;;  %v1510_v52 = vadd.f32 %v1507_v16, %v1506_v13 }
 0x6f4   : > { %v1771_v17 = vpop.f32.mrb[21].mxu1 }
 0x6f5   : > { %v2995_v30 = vadd.f32 %v1771_v17, %v1770_v50  ;;  %v1773_v21 = vpop.f32.mrb[22].mxu1 }
 0x6f6   : > { %v1774_v22 = vpop.f32.mrb[23].mxu1 }
 0x6f7   : > { %v1498_v47 = vadd.f32 %v2995_v30, %v1497_v62  ;;  %v1508_v32 = vmul.f32 %v2995_v30, %v2995_v30  ;;  %v1775_v34 = vadd.f32 %v1774_v22, %v1773_v21  ;;  %v1894_v22 = vld [vmem:[#allocation7 + $0x8] sm:$0xff] }
 0x6f9   : > { %v1511_v25 = vadd.f32 %v1510_v52, %v1508_v32  ;;  %v1499_v56 = vadd.f32 %v1775_v34, %v1498_v47  ;;  %v1509_v14 = vmul.f32 %v1775_v34, %v1775_v34 }
 0x6fb   : > { %v1500_v53 = vrot.slane %v1499_v56, 4  ;;  %v1512_v37 = vadd.f32 %v1511_v25, %v1509_v14 }
 0x6fd   : > { %v1501_v33 = vadd.f32 %v1500_v53, %v1499_v56  ;;  %v1513_v8 = vrot.slane %v1512_v37, 4 }
 0x6ff   : > { %v1502_v42 = vrot.slane %v1501_v33, 2  ;;  %v1514_v57 = vadd.f32 %v1513_v8, %v1512_v37 }
 0x701   : > { %v1503_v7 = vadd.f32 %v1502_v42, %v1501_v33  ;;  %v1515_v27 = vrot.slane %v1514_v57, 2 }
 0x703   : > { %v1504_v31 = vrot.slane %v1503_v7, 1  ;;  %v1516_v1 = vadd.f32 %v1515_v27, %v1514_v57 }
 0x705   : > { %v1505_v61 = vadd.f32 %v1504_v31, %v1503_v7  ;;  %v1517_v24 = vrot.slane %v1516_v1, 1 }
 0x707   : > { %1519 = vrot.lane.b32.xlu0 %v1505_v61, %s2034_s16  ;;  %v1518_v6 = vadd.f32 %v1517_v24, %v1516_v1 }
 0x709   : > { %1522 = vrot.lane.b32.xlu1 %v1518_v6, %s2034_s16  ;;  %s1585_s16 = sshll.u32 %s2040_s13, 4  ;;  %s1586_s16 = int_to_ptr.vmem [resolvable:$true] %s1585_s16 }
 0x70a   : > { %s1957_s18 = scalar_lea.vmem %s1586_s16, 512  ;;  %p1964_p13 = scmp.lt.s32.totalorder %s1586_s16, %s1586_s16 }
 0x70b   : > { %p1958_p6 = scmp.ne.s32.totalorder %s1586_s16, %s1957_s18  ;;  %p1965_p9 = scmp.lt.s32.totalorder %s1957_s18, %s1957_s18 }
 0x70d   : > { %p1959_p1 = pnand %p1958_p6, %p1800_p3  ;;  %p1966_p4 = por %p1965_p9, %p1964_p13 }
 0x70f   : > { %p1960_p2 = pneg %p1959_p1 }
 0x711   : > { %p1967_p5 = pnand %p1966_p4, %p1960_p2 }
 0x779   : > { %v1520_v40 = vpop.permute.xlu0 %1519 }
 0x77a   : > { %v1521_v9 = vadd.f32 %v1520_v40, %v1505_v61 }
 0x77b   : > { %v1523_v18 = vpop.permute.xlu1 %1522 }
 0x77c   : > { %v1524_v26 = vadd.f32 %v1523_v18, %v1518_v6  ;;  %1525 = vrot.lane.b32.xlu0 %v1521_v9, %s2035_s7 }
 0x77e   : > { %1528 = vrot.lane.b32.xlu1 %v1524_v26, %s2035_s7 }
 0x7ee   : > { %v1526_v28 = vpop.permute.xlu0 %1525 }
 0x7ef   : > { %v1527_v38 = vadd.f32 %v1526_v28, %v1521_v9 }
 0x7f0   : > { %v1529_v48 = vpop.permute.xlu1 %1528 }
 0x7f1   : > { %v1530_v63 = vadd.f32 %v1529_v48, %v1524_v26  ;;  %1531 = vrot.lane.b32.xlu0 %v1527_v38, %s2036_s21 }
 0x7f3   : > { %1534 = vrot.lane.b32.xlu1 %v1530_v63, %s2036_s21 }
 0x863   : > { %v1532_v60 = vpop.permute.xlu0 %1531 }
 0x864   : > { %v1533_v19 = vadd.f32 %v1532_v60, %v1527_v38 }
 0x865   : > { %v1535_v54 = vpop.permute.xlu1 %1534 }
 0x866   : > { %v1536_v2 = vadd.f32 %v1535_v54, %v1530_v63  ;;  %1537 = vrot.lane.b32.xlu0 %v1533_v19, %s2039_s15 }
 0x868   : > { %1540 = vrot.lane.b32.xlu1 %v1536_v2, %s2039_s15 }
 0x8d8   : > { %v1538_v29 = vpop.permute.xlu0 %1537 }
 0x8d9   : > { %v1539_v46 = vadd.f32 %v1538_v29, %v1533_v19 }
 0x8da   : > { %v1541_v3 = vpop.permute.xlu1 %1540 }
 0x8db   : > { %v1543_v43 = vmul.f32 0.001953125, %v1539_v46  ;;  %v1542_v49 = vadd.f32 %v1541_v3, %v1536_v2 }
 0x8dd   : > { %v1545_v51 = vmul.f32 %v1543_v43, %v1543_v43  ;;  %v1544_v44 = vmul.f32 0.001953125, %v1542_v49 }
 0x8df   : > { %v1546_v41 = vsub.f32 %v1544_v44, %v1545_v51 }
 0x8e1   : > { %v1547_v10 = vadd.f32 1e-05, %v1546_v41 }
 0x8e3   : > { %1891 = vrsqrt.f32 %v1547_v10 }
 0x8ed   : > { %v1892_v12 = vpop.eup %1891 }
 0x8ee   : > { %v1549_v5 = vmul.f32 %v1892_v12, %v352_v39 }
 0x8f0   : > { %v1550_v11 = vmul.f32 %v1549_v5, %v1543_v43  ;;  %v1558_v55 = vrot.slane %v1549_v5, %v3109_v23  ;;  %v1893_v23 = vld [vmem:[#allocation7] sm:$0xff] }
 0x8f2   : > { %v1552_v15 = vrot.slane %v1550_v11, 7  ;;  %v1559_v36 = vmul.f32 %v2985_v4, %v1558_v55  ;;  %v1560_v45 = vmul.f32 %v2987_v59, %v1558_v55  ;;  %v1561_v20 = vmul.f32 %v2995_v30, %v1558_v55  ;;  %v1895_v4 = vld [vmem:[#allocation7 + $0x10] sm:$0xff] }
 0x8f3   : > { %v1562_v16 = vmul.f32 %v1775_v34, %v1558_v55 }
 0x8f4   : > { %v1554_v35 = vsub.f32 %v352_v39, %v1552_v15 }
 0x8f6   : > { %v1566_v0 = vrot.slane %v1554_v35, %v2333_v58  ;;  %v1896_v58 = vld [vmem:[#allocation7 + $0x18] sm:$0xff] }
 0x8f8   : > { %v1567_v50 = vadd.f32 %v1566_v0, %v1559_v36  ;;  %v1568_v17 = vadd.f32 %v1566_v0, %v1560_v45  ;;  %v1569_v13 = vadd.f32 %v1566_v0, %v1561_v20  ;;  %v1570_v62 = vadd.f32 %v1566_v0, %v1562_v16 }
 0x8fa   : > { %v1571_v21 = vadd.f32 %v1893_v23, %v1567_v50  ;;  %v1572_v52 = vadd.f32 %v1894_v22, %v1568_v17  ;;  %v1573_v47 = vadd.f32 %v1895_v4, %v1569_v13  ;;  %v1574_v32 = vadd.f32 %v1896_v58, %v1570_v62 }
 0x8fc   : > { %1575 = vst [vmem:[#allocation7] sm:$0xff] %v1571_v21  ;;  %1576 = vst [vmem:[#allocation7 + $0x8] sm:$0xff] %v1572_v52 }
 0x8fd   : > { %1577 = vst [vmem:[#allocation7 + $0x10] sm:$0xff] %v1573_v47  ;;  %1578 = vst [vmem:[#allocation7 + $0x18] sm:$0xff] %v1574_v32 }
 0x8fe   : > { %1970 = shalt.err (!%p1967_p5)
}
 0x8ff   : > { %s1971_s17 = scalar_lea.hbm %s3057_s6, 512 }
 0x900   : > { %p1972_p10 = scmp.ne.s32.totalorder %s3057_s6, %s1971_s17  ;;  %p1977_p7 = scmp.lt.u32.totalorder %s1971_s17, %s3057_s6 }
 0x902   : > { %p1973_p12 = pnand %p1972_p10, %p1800_p3 }
 0x904   : > { %p1974_p0 = pneg %p1973_p12 }
 0x906   : > { %p1979_p8 = pnand %p1977_p7, %p1974_p0 }
 0x908   : > { %1982 = shalt.err (!%p1979_p8)
}
 0x909   : > { %s2041_s14 = smov 128  }
 0x90a   : > { %1789 = dma.vmem_to_hbm [thread:$0]  (%p1800_p3), %s1586_s16, 512, %s3057_s6, [#allocation4], %s2041_s14, %s2041_s14, %s2039_s15  }
 0x90b   : > { %2008 = dma.done.wait (%p1800_p3), [#allocation4], 512  }
 0x90c   : > { %2010 = vsyncadd (%p1800_p3), [#allocation4], 4294966784 }
 0x90d PF: > { %p20_p11 = scmp.ge.s32.totalorder %s2099_s26, 4   ;;  %s3112_s21 = smov %s2017_s22 }
 0x90e   : > { %s3113_s22 = smov %s2021_s23  ;;  %s3114_s23 = smov %s2109_s29 }
 0x90f   : > { %s3115_s24 = smov %s2099_s26  ;;  %22 = sbr.rel (!%p20_p11) target bundleno = 6 (0x6), region = 104 }
 0x916   :  { %1601 = vsyncpa [#allocation3], 1 }
 0x917   :  { %1603 = vsyncpa [#allocation3 + $0x1], 1 }
 0x918   :  { %1604 = vsyncpa [#allocation6], 1 }
 0x919   :  { %1606 = vsyncpa [#allocation6 + $0x1], 1 }
 0x91a   :  { %1607 = vsyncpa [#allocation4], 1 }
 0x91b   :  { %1609 = vsyncpa [#allocation4 + $0x1], 1 }

</bundles_post_ra>
